<compile_context>
chip_gen: v7x
topology: tpu7x:2x2x1
jax: 0.10.0
libtpu: 0.0.40
codegen_flags: <defaults>
</compile_context>

<pallas_src>
import functools

import jax
import jax.numpy as jnp
from jax.experimental import pallas as pl
from jax.experimental.pallas import tpu as pltpu

TAB_HIDDEN1 = 512
TAB_HIDDEN2 = 128
IMG_FEATURES = 1280   # EfficientNetV2-S pooled feature width


def _round_up(a, b):
    return (a + b - 1) // b * b


def _choose_tile(batch, tile_b):
    """Batch tile: multiple of 128, >=2 (even) grid steps when B allows."""
    tile_b = max(128, (tile_b // 128) * 128)
    if batch <= 128:
        return 128
    num = max(2, pl.cdiv(batch, tile_b))
    if num % 2:               # even step count -> v7x TCs get equal work
        num += 1
    return min(tile_b, _round_up(pl.cdiv(batch, num), 128))


def _ensemble_kernel(x_tab_ref, x_img_ref, w1_ref, c1_ref, w2_ref, c2_ref,
                     w3t_ref, w3i_ref, b3_ref, o_ref):
    # --- TabularNet (eval): fc1 -> BN1 -> SiLU -> [drop] -> fc2 -> BN2 -> SiLU ---
    # BN folded into (w, c); dropout is identity at inference.  All f32.
    h = jnp.dot(x_tab_ref[...], w1_ref[...], preferred_element_type=jnp.float32)
    h = h + c1_ref[...]
    h = h * jax.nn.sigmoid(h)            # SiLU in f32 (safe on v5e: no bf16 EUP)
    h = jnp.dot(h, w2_ref[...], preferred_element_type=jnp.float32)
    h = h + c2_ref[...]
    h = h * jax.nn.sigmoid(h)            # (tile_b, 128) f32

    # --- Ensemble head: concat([tab, img]) @ W(1408,1) + b  as VPU/XLU reduces ---
    tab = jnp.sum(h * w3t_ref[...], axis=-1)                                   # (tile_b,)
    img = jnp.sum(x_img_ref[...].astype(jnp.float32) * w3i_ref[...], axis=-1)  # (tile_b,)

    # Lane-dense (1, tile_b) output slab; ragged tail lanes are masked on write.
    o_ref[...] = (tab + img + b3_ref[0])[None, :].astype(o_ref.dtype)


def _fold_bn_into_linear(w, b, gamma, beta, mean, var, eps=1e-5):
    """BN(x @ W + b) == x @ (W * s) + ((b - mean) * s + beta), s = gamma/sqrt(var+eps)."""
    scale = gamma / jnp.sqrt(var + eps)
    return w * scale[None, :], (b - mean) * scale + beta


@functools.partial(jax.jit, static_argnames=("tile_b",))
def ensemble_net_forward(x_tabular, x_image_features, params, tile_b=1024):
    """Fused EnsembleNet forward (eval semantics).

    x_tabular:        (B, num_features) f32
    x_image_features: (B, 1280) f32 or bf16 -- pooled ImgNet/EfficientNet features,
                      consumed in its native dtype (no wrapper-side convert/pad).
    returns:          (B, 1) f32
    """
    B, F = x_tabular.shape
    assert x_image_features.shape == (B, IMG_FEATURES)

    # Fold BatchNorm running stats into the linear layers (pure parameter glue).
    w1, c1 = _fold_bn_into_linear(params["fc1_w"], params["fc1_b"],
                                  params["bn1_gamma"], params["bn1_beta"],
                                  params["bn1_mean"], params["bn1_var"])
    w2, c2 = _fold_bn_into_linear(params["fc2_w"], params["fc2_b"],
                                  params["bn2_gamma"], params["bn2_beta"],
                                  params["bn2_mean"], params["bn2_var"])
    w1 = w1.astype(jnp.float32)
    w2 = w2.astype(jnp.float32)
    c1 = c1[None, :].astype(jnp.float32)
    c2 = c2[None, :].astype(jnp.float32)

    # Split the 1408->1 ensemble head into tabular / image rows.
    w3t = params["ens_w"][:TAB_HIDDEN2, 0][None, :].astype(jnp.float32)   # (1, 128)
    w3i = params["ens_w"][TAB_HIDDEN2:, 0][None, :].astype(jnp.float32)   # (1, 1280)
    b3 = params["ens_b"].reshape(1).astype(jnp.float32)                   # SMEM scalar

    eff_tile = _choose_tile(B, tile_b)
    num_tiles = pl.cdiv(B, eff_tile)          # ragged last tile handled by Pallas
    # 32 MiB scoped VMEM covers tile_b<=1024 comfortably (and is v7x-safe);
    # only ask for more when a bigger tile is explicitly requested (v5e/v6e).
    vmem_limit = 64 * 1024 * 1024 if eff_tile > 1024 else 32 * 1024 * 1024

    const = lambda i: (0, 0)   # weights: resident in VMEM across all grid steps

    out = pl.pallas_call(
        _ensemble_kernel,
        out_shape=jax.ShapeDtypeStruct((1, B), jnp.float32),
        grid=(num_tiles,),
        in_specs=[
            pl.BlockSpec((eff_tile, F), lambda i: (i, 0)),             # x_tab tile (f32)
            pl.BlockSpec((eff_tile, IMG_FEATURES), lambda i: (i, 0)),  # x_img tile (native dtype)
            pl.BlockSpec((F, TAB_HIDDEN1), const),                     # w1 (BN folded)
            pl.BlockSpec((1, TAB_HIDDEN1), const),                     # c1
            pl.BlockSpec((TAB_HIDDEN1, TAB_HIDDEN2), const),           # w2 (BN folded)
            pl.BlockSpec((1, TAB_HIDDEN2), const),                     # c2
            pl.BlockSpec((1, TAB_HIDDEN2), const),                     # head row (tab)
            pl.BlockSpec((1, IMG_FEATURES), const),                    # head row (img)
            pl.BlockSpec(memory_space=pltpu.MemorySpace.SMEM),         # head bias scalar
        ],
        out_specs=pl.BlockSpec((1, eff_tile), lambda i: (0, i)),       # lane-dense slab
        compiler_params=pltpu.CompilerParams(
            # TODO(synk): if profiling shows "parallel" does not shard the batch
            # axis across v7x's two TensorCores, switch to pltpu.CORE_PARALLEL.
            dimension_semantics=("parallel",),
            vmem_limit_bytes=vmem_limit,
        ),
    )(x_tabular, x_image_features, w1, c1, w2, c2, w3t, w3i, b3)

    return out.reshape(B, 1)


def make_params(key, num_features):
    """Deterministic synthetic parameters matching EnsembleNet's layer shapes."""
    ks = jax.random.split(key, 16)
    f32 = jnp.float32

    def rnd(k, shape, s=0.05):
        return s * jax.random.normal(k, shape, f32)

    return {
        # Linear weights stored as (in, out) == PyTorch weight.T
        "fc1_w": rnd(ks[0], (num_features, TAB_HIDDEN1)),
        "fc1_b": rnd(ks[1], (TAB_HIDDEN1,)),
        "fc2_w": rnd(ks[2], (TAB_HIDDEN1, TAB_HIDDEN2)),
        "fc2_b": rnd(ks[3], (TAB_HIDDEN2,)),
        # BatchNorm1d(512)
        "bn1_gamma": 1.0 + 0.1 * jax.random.normal(ks[4], (TAB_HIDDEN1,), f32),
        "bn1_beta": 0.1 * jax.random.normal(ks[5], (TAB_HIDDEN1,), f32),
        "bn1_mean": 0.05 * jax.random.normal(ks[6], (TAB_HIDDEN1,), f32),
        "bn1_var": jnp.abs(1.0 + 0.1 * jax.random.normal(ks[7], (TAB_HIDDEN1,), f32)),
        # BatchNorm1d(128)
        "bn2_gamma": 1.0 + 0.1 * jax.random.normal(ks[8], (TAB_HIDDEN2,), f32),
        "bn2_beta": 0.1 * jax.random.normal(ks[9], (TAB_HIDDEN2,), f32),
        "bn2_mean": 0.05 * jax.random.normal(ks[10], (TAB_HIDDEN2,), f32),
        "bn2_var": jnp.abs(1.0 + 0.1 * jax.random.normal(ks[11], (TAB_HIDDEN2,), f32)),
        # EnsembleNet output: Linear(128 + 1280 -> 1)
        "ens_w": rnd(ks[12], (TAB_HIDDEN2 + IMG_FEATURES, 1)),
        "ens_b": rnd(ks[13], (1,)),
    }


def reference_forward(x_tab, img_feat, params, eps=1e-5):
    """Plain-JAX f32 reference mirroring PyTorch eval-mode EnsembleNet semantics."""
    h = x_tab @ params["fc1_w"] + params["fc1_b"]
    h = (h - params["bn1_mean"]) / jnp.sqrt(params["bn1_var"] + eps)
    h = h * params["bn1_gamma"] + params["bn1_beta"]
    h = h * jax.nn.sigmoid(h)
    h = h @ params["fc2_w"] + params["fc2_b"]
    h = (h - params["bn2_mean"]) / jnp.sqrt(params["bn2_var"] + eps)
    h = h * params["bn2_gamma"] + params["bn2_beta"]
    h = h * jax.nn.sigmoid(h)
    cat = jnp.concatenate([h, img_feat.astype(jnp.float32)], axis=1)  # dropout: identity (eval)
    return cat @ params["ens_w"] + params["ens_b"]


if __name__ == "__main__":
    key = jax.random.PRNGKey(0)
    k_xt, k_xi, k_p = jax.random.split(key, 3)

    num_features = 32
    batch = 8
    x_tab = jax.random.normal(k_xt, (batch, num_features), jnp.float32)
    # TODO(synk): ImgNet's pretrained EfficientNetV2-S backbone has no clean
    # Pallas equivalent here; the kernel consumes its pooled (B, 1280) feature
    # vector directly.
    x_img_feat = jax.random.normal(k_xi, (batch, IMG_FEATURES), jnp.float32)
    params = make_params(k_p, num_features)

    # TODO(synk): training-mode Dropout / batch-statistics BatchNorm not
    # implemented (inference semantics only).

    out = ensemble_net_forward(x_tab, x_img_feat, params)
    out = jax.block_until_ready(out)

    ref = reference_forward(x_tab, x_img_feat, params)
    # All-f32 kernel; tolerance covers MXU f32 pass-splitting differences.
    if out.shape == ref.shape and bool(jnp.allclose(out, ref, atol=1e-2, rtol=1e-2)):
        print("KERNEL_OK")
    else:
        print("MISMATCH max_err=", float(jnp.max(jnp.abs(out - ref))))
</pallas_src>

<mosaic_0001>
module attributes {stable_mosaic.version = 11 : i64} {
  func.func @_ensemble_kernel(%arg0: i32, %arg1: memref<128x32xf32, #tpu.memory_space<vmem>>, %arg2: memref<128x1280xf32, #tpu.memory_space<vmem>>, %arg3: memref<32x512xf32, #tpu.memory_space<vmem>>, %arg4: memref<1x512xf32, #tpu.memory_space<vmem>>, %arg5: memref<512x128xf32, #tpu.memory_space<vmem>>, %arg6: memref<1x128xf32, #tpu.memory_space<vmem>>, %arg7: memref<1x128xf32, #tpu.memory_space<vmem>>, %arg8: memref<1x1280xf32, #tpu.memory_space<vmem>>, %arg9: memref<1xf32, #tpu.memory_space<smem>>, %arg10: memref<1x128xf32, #tpu.memory_space<vmem>>) attributes {dimension_semantics = [#tpu.dimension_semantics<parallel>], iteration_bounds = array<i64: 1>, scalar_prefetch = 0 : i64, scratch_operands = 0 : i64, tpu.core_type = #tpu.core_type<tc>, window_params = [{transform_indices = @transform_0, window_bounds = array<i64: 128, 32>}, {transform_indices = @transform_1, window_bounds = array<i64: 128, 1280>}, {pipeline_mode = #tpu.pipeline_mode<synchronous>, transform_indices = @transform_2, window_bounds = array<i64: 32, 512>}, {pipeline_mode = #tpu.pipeline_mode<synchronous>, transform_indices = @transform_3, window_bounds = array<i64: 1, 512>}, {pipeline_mode = #tpu.pipeline_mode<synchronous>, transform_indices = @transform_4, window_bounds = array<i64: 512, 128>}, {pipeline_mode = #tpu.pipeline_mode<synchronous>, transform_indices = @transform_5, window_bounds = array<i64: 1, 128>}, {pipeline_mode = #tpu.pipeline_mode<synchronous>, transform_indices = @transform_6, window_bounds = array<i64: 1, 128>}, {pipeline_mode = #tpu.pipeline_mode<synchronous>, transform_indices = @transform_7, window_bounds = array<i64: 1, 1280>}, {transform_indices = @transform_8, window_bounds = array<i64: 1>}, {transform_indices = @transform_9, window_bounds = array<i64: 1, 128>}]} {
    %c0 = arith.constant 0 : index
    %c0_0 = arith.constant 0 : index
    %0 = vector.load %arg1[%c0, %c0_0] : memref<128x32xf32, #tpu.memory_space<vmem>>, vector<128x32xf32>
    %c0_1 = arith.constant 0 : index
    %c0_2 = arith.constant 0 : index
    %1 = vector.load %arg3[%c0_1, %c0_2] : memref<32x512xf32, #tpu.memory_space<vmem>>, vector<32x512xf32>
    %cst = arith.constant dense<0.000000e+00> : vector<128x512xf32>
    %2 = tpu.matmul %0, %1, %cst {dimension_numbers = #tpu.dot_dimension_numbers<[1], [0], [0], [1], [0, 0, 1, 1], [], []>} : vector<128x32xf32>, vector<32x512xf32>, vector<128x512xf32> -> vector<128x512xf32>
    %c0_3 = arith.constant 0 : index
    %c0_4 = arith.constant 0 : index
    %3 = vector.load %arg4[%c0_3, %c0_4] : memref<1x512xf32, #tpu.memory_space<vmem>>, vector<1x512xf32>
    %4 = vector.broadcast %3 : vector<1x512xf32> to vector<128x512xf32>
    %5 = arith.addf %2, %4 : vector<128x512xf32>
    %6 = arith.negf %5 : vector<128x512xf32>
    %7 = math.exp %6 : vector<128x512xf32>
    %cst_5 = arith.constant 1.000000e+00 : f32
    %8 = vector.broadcast %cst_5 : f32 to vector<128x512xf32>
    %9 = arith.addf %8, %7 : vector<128x512xf32>
    %10 = arith.divf %8, %9 : vector<128x512xf32>
    %11 = arith.mulf %5, %10 : vector<128x512xf32>
    %c0_6 = arith.constant 0 : index
    %c0_7 = arith.constant 0 : index
    %12 = vector.load %arg5[%c0_6, %c0_7] : memref<512x128xf32, #tpu.memory_space<vmem>>, vector<512x128xf32>
    %cst_8 = arith.constant dense<0.000000e+00> : vector<128x128xf32>
    %13 = tpu.matmul %11, %12, %cst_8 {dimension_numbers = #tpu.dot_dimension_numbers<[1], [0], [0], [1], [0, 0, 1, 1], [], []>} : vector<128x512xf32>, vector<512x128xf32>, vector<128x128xf32> -> vector<128x128xf32>
    %c0_9 = arith.constant 0 : index
    %c0_10 = arith.constant 0 : index
    %14 = vector.load %arg6[%c0_9, %c0_10] : memref<1x128xf32, #tpu.memory_space<vmem>>, vector<1x128xf32>
    %15 = vector.broadcast %14 : vector<1x128xf32> to vector<128x128xf32>
    %16 = arith.addf %13, %15 : vector<128x128xf32>
    %17 = arith.negf %16 : vector<128x128xf32>
    %18 = math.exp %17 : vector<128x128xf32>
    %cst_11 = arith.constant 1.000000e+00 : f32
    %19 = vector.broadcast %cst_11 : f32 to vector<128x128xf32>
    %20 = arith.addf %19, %18 : vector<128x128xf32>
    %21 = arith.divf %19, %20 : vector<128x128xf32>
    %22 = arith.mulf %16, %21 : vector<128x128xf32>
    %c0_12 = arith.constant 0 : index
    %c0_13 = arith.constant 0 : index
    %23 = vector.load %arg7[%c0_12, %c0_13] : memref<1x128xf32, #tpu.memory_space<vmem>>, vector<1x128xf32>
    %24 = vector.broadcast %23 : vector<1x128xf32> to vector<128x128xf32>
    %25 = arith.mulf %22, %24 : vector<128x128xf32>
    %cst_14 = arith.constant dense<0.000000e+00> : vector<128xf32>
    %26 = vector.multi_reduction <add>, %25, %cst_14 [1] : vector<128x128xf32> to vector<128xf32>
    %c0_15 = arith.constant 0 : index
    %c0_16 = arith.constant 0 : index
    %27 = vector.load %arg2[%c0_15, %c0_16] : memref<128x1280xf32, #tpu.memory_space<vmem>>, vector<128x1280xf32>
    %c0_17 = arith.constant 0 : index
    %c0_18 = arith.constant 0 : index
    %28 = vector.load %arg8[%c0_17, %c0_18] : memref<1x1280xf32, #tpu.memory_space<vmem>>, vector<1x1280xf32>
    %29 = vector.broadcast %28 : vector<1x1280xf32> to vector<128x1280xf32>
    %30 = arith.mulf %27, %29 : vector<128x1280xf32>
    %cst_19 = arith.constant dense<0.000000e+00> : vector<128xf32>
    %31 = vector.multi_reduction <add>, %30, %cst_19 [1] : vector<128x1280xf32> to vector<128xf32>
    %32 = arith.addf %26, %31 : vector<128xf32>
    %c0_20 = arith.constant 0 : index
    %33 = memref.load %arg9[%c0_20] : memref<1xf32, #tpu.memory_space<smem>>
    %34 = vector.broadcast %33 : f32 to vector<128xf32>
    %35 = arith.addf %32, %34 : vector<128xf32>
    %36 = vector.shape_cast %35 : vector<128xf32> to vector<1x128xf32>
    %c0_21 = arith.constant 0 : index
    %c0_22 = arith.constant 0 : index
    %37 = vector.load %arg10[%c0_21, %c0_22] : memref<1x128xf32, #tpu.memory_space<vmem>>, vector<1x128xf32>
    tpu.vector_store %arg10[%c0_21, %c0_22], %36 {strides = array<i32>} : memref<1x128xf32, #tpu.memory_space<vmem>>, vector<1x128xf32>,
    return
  }
  func.func @transform_0(%arg0: i32) -> (i32, i32) {
    %c0_i32 = arith.constant 0 : i32
    %c0_i32_0 = arith.constant 0 : i32
    return %arg0, %c0_i32 : i32, i32
  }
  func.func @transform_1(%arg0: i32) -> (i32, i32) {
    %c0_i32 = arith.constant 0 : i32
    %c0_i32_0 = arith.constant 0 : i32
    return %arg0, %c0_i32 : i32, i32
  }
  func.func @transform_2(%arg0: i32) -> (i32, i32) {
    %c0_i32 = arith.constant 0 : i32
    %c0_i32_0 = arith.constant 0 : i32
    %c0_i32_1 = arith.constant 0 : i32
    return %c0_i32, %c0_i32_0 : i32, i32
  }
  func.func @transform_3(%arg0: i32) -> (i32, i32) {
    %c0_i32 = arith.constant 0 : i32
    %c0_i32_0 = arith.constant 0 : i32
    %c0_i32_1 = arith.constant 0 : i32
    return %c0_i32, %c0_i32_0 : i32, i32
  }
  func.func @transform_4(%arg0: i32) -> (i32, i32) {
    %c0_i32 = arith.constant 0 : i32
    %c0_i32_0 = arith.constant 0 : i32
    %c0_i32_1 = arith.constant 0 : i32
    return %c0_i32, %c0_i32_0 : i32, i32
  }
  func.func @transform_5(%arg0: i32) -> (i32, i32) {
    %c0_i32 = arith.constant 0 : i32
    %c0_i32_0 = arith.constant 0 : i32
    %c0_i32_1 = arith.constant 0 : i32
    return %c0_i32, %c0_i32_0 : i32, i32
  }
  func.func @transform_6(%arg0: i32) -> (i32, i32) {
    %c0_i32 = arith.constant 0 : i32
    %c0_i32_0 = arith.constant 0 : i32
    %c0_i32_1 = arith.constant 0 : i32
    return %c0_i32, %c0_i32_0 : i32, i32
  }
  func.func @transform_7(%arg0: i32) -> (i32, i32) {
    %c0_i32 = arith.constant 0 : i32
    %c0_i32_0 = arith.constant 0 : i32
    %c0_i32_1 = arith.constant 0 : i32
    return %c0_i32, %c0_i32_0 : i32, i32
  }
  func.func @transform_8(%arg0: i32) -> i32 {
    %c0_i32 = arith.constant 0 : i32
    %c0_i32_0 = arith.constant 0 : i32
    return %c0_i32 : i32
  }
  func.func @transform_9(%arg0: i32) -> (i32, i32) {
    %c0_i32 = arith.constant 0 : i32
    %c0_i32_0 = arith.constant 0 : i32
    return %c0_i32, %arg0 : i32, i32
  }
}

</mosaic_0001>

<bundles_post_ra>
// kernel: ensemble_net_forward.1
= control target key start
LH: loop header
LB: loop body
LE: loop exit
PB: predicated region body
PF: predicated region fallthrough
CT: control target
= control target key end

     0   :  { %v2862_v7 = vmov 0.0   ;;  %vm88_vm0 = vcmask 261120   ;;  %s4521_s0 = inlined_call_operand.vmem [shape: f32[8,32], index: 0, kind: input, shape index: {}]   ;;  %s4522_s1 = inlined_call_operand.vmem [shape: f32[8,1280], index: 1, kind: input, shape index: {}]   ;;  %s4523_s2 = inlined_call_operand.vmem [shape: f32[32,512], index: 2, kind: input, shape index: {}]   ;;  %s4524_s3 = inlined_call_operand.vmem [shape: f32[1,512], index: 3, kind: input, shape index: {}]   ;;  %s4525_s4 = inlined_call_operand.vmem [shape: f32[512,128], index: 4, kind: input, shape index: {}]   ;;  %s4526_s5 = inlined_call_operand.vmem [shape: f32[1,128], index: 5, kind: input, shape index: {}]   ;;  %s4527_s6 = inlined_call_operand.vmem [shape: f32[1,128], index: 6, kind: input, shape index: {}]   ;;  %s4528_s7 = inlined_call_operand.vmem [shape: f32[1,1280], index: 7, kind: input, shape index: {}]   ;;  %s4529_s8 = inlined_call_operand.<no memory space> [shape: f32[1], index: 8, kind: input, shape index: {}]   ;;  %s4530_s9 = inlined_call_operand.hbm [shape: f32[1,8], index: 9, kind: output, shape index: {}]  }
   0x1   :  { %v51_v0 = vld [vmem:[%s4523_s2 + $0x8] sm:$0xff]  ;;  %v53_v2 = vld [vmem:[%s4523_s2 + $0x18] sm:$0xff]  ;;  %v50_v5 = vld [vmem:[%s4523_s2] sm:$0xff]  ;;  %201 = vmatprep.mubr.f32.mxu0 %v2862_v7  ;;  %362 = vmatprep.mubr.f32.mxu1 %v2862_v7 }
   0x2   :  { %v55_v1 = vld [vmem:[%s4523_s2 + $0x28] sm:$0xff]  ;;  %v57_v4 = vld [vmem:[%s4523_s2 + $0x38] sm:$0xff]  ;;  %v54_v6 = vld [vmem:[%s4523_s2 + $0x20] sm:$0xff] }
   0x3   :  { %v2436_v3 = vpack.c.bf16 %v55_v1, %v51_v0  ;;  %v2444_v8 = vpack.c.bf16 %v57_v4, %v53_v2  ;;  %v2438_v9 = vpack.c.bf16 %v54_v6, %v50_v5  ;;  %v52_v10 = vld [vmem:[%s4523_s2 + $0x10] sm:$0xff]  ;;  %v59_v12 = vld [vmem:[%s4523_s2 + $0x48] sm:$0xff]  ;;  %v61_v15 = vld [vmem:[%s4523_s2 + $0x58] sm:$0xff] }
   0x4   :  { %v56_v11 = vld [vmem:[%s4523_s2 + $0x30] sm:$0xff]  ;;  %v63_v14 = vld [vmem:[%s4523_s2 + $0x68] sm:$0xff]  ;;  %v65_v16 = vld [vmem:[%s4523_s2 + $0x78] sm:$0xff] }
   0x5   :  { %2437 = vmatprep.subr.bf16.mxu0 %v2436_v3  ;;  %v2446_v13 = vpack.c.bf16 %v56_v11, %v52_v10  ;;  %2445 = vmatprep.subr.bf16.mxu1 %v2444_v8  ;;  %v2440_v17 = vpack.c.bf16 %v63_v14, %v59_v12  ;;  %v2448_v18 = vpack.c.bf16 %v65_v16, %v61_v15  ;;  %v58_v19 = vld [vmem:[%s4523_s2 + $0x40] sm:$0xff]  ;;  %v60_v21 = vld [vmem:[%s4523_s2 + $0x50] sm:$0xff]  ;;  %v35_v26 = vld [vmem:[%s4521_s0 + $0x8] sm:$0xff] }
   0x6   :  { %2439 = vmatpush1.bf16.msra.mxu0 %v2438_v9  ;;  %v62_v20 = vld [vmem:[%s4523_s2 + $0x60] sm:$0xff]  ;;  %v64_v23 = vld [vmem:[%s4523_s2 + $0x70] sm:$0xff]  ;;  %v924_v28 = vld [vmem:[%s4525_s4 + $0x88] sm:$0xff] }
   0x7   :  { %2447 = vmatpush1.bf16.msra.mxu1 %v2446_v13  ;;  %v2442_v22 = vpack.c.bf16 %v62_v20, %v58_v19  ;;  %2441 = vmatprep.subr.bf16.mxu0 %v2440_v17  ;;  %v2450_v24 = vpack.c.bf16 %v64_v23, %v60_v21  ;;  %v34_v25 = vld [vmem:[%s4521_s0] sm:$0xff]  ;;  %v908_v30 = vld [vmem:[%s4525_s4 + $0x8] sm:$0xff]  ;;  %v925_v38 = vld [vmem:[%s4525_s4 + $0x90] sm:$0xff] }
   0x8   :  { %2449 = vmatprep.subr.bf16.mxu1 %v2448_v18  ;;  %v923_v27 = vld [vmem:[%s4525_s4 + $0x80] sm:$0xff]  ;;  %v956_v33 = vld [vmem:[%s4525_s4 + $0x188] sm:$0xff]  ;;  %v926_v39 = vld [vmem:[%s4525_s4 + $0x98] sm:$0xff] }
   0x9   :  { %v907_v29 = vld [vmem:[%s4525_s4] sm:$0xff]  ;;  %v2452_v31 = vpack.c.bf16 %v924_v28, %v923_v27  ;;  %v940_v37 = vld [vmem:[%s4525_s4 + $0x108] sm:$0xff]  ;;  %v2456_v41 = vpack.c.bf16 %v926_v39, %v925_v38  ;;  %v909_v42 = vld [vmem:[%s4525_s4 + $0x10] sm:$0xff] }
   0xa   :  { %2443 = vmatpush1.bf16.msra.mxu0 %v2442_v22  ;;  %v955_v32 = vld [vmem:[%s4525_s4 + $0x180] sm:$0xff]  ;;  %v2454_v35 = vpack.c.bf16 %v908_v30, %v907_v29  ;;  %v910_v43 = vld [vmem:[%s4525_s4 + $0x18] sm:$0xff]  ;;  %v957_v44 = vld [vmem:[%s4525_s4 + $0x190] sm:$0xff] }
   0xb   :  { %2451 = vmatpush1.bf16.msra.mxu1 %v2450_v24  ;;  %v939_v34 = vld [vmem:[%s4525_s4 + $0x100] sm:$0xff]  ;;  %v2484_v36 = vpack.c.bf16 %v956_v33, %v955_v32  ;;  %2453 = vmatprep.subr.bf16.mxu0 %v2452_v31  ;;  %v958_v45 = vld [vmem:[%s4525_s4 + $0x198] sm:$0xff]  ;;  %v941_v46 = vld [vmem:[%s4525_s4 + $0x110] sm:$0xff]  ;;  %v2458_v52 = vpack.c.bf16 %v910_v43, %v909_v42 }
   0xc   :  { %v2486_v40 = vpack.c.bf16 %v940_v37, %v939_v34  ;;  %v942_v47 = vld [vmem:[%s4525_s4 + $0x118] sm:$0xff]  ;;  %v36_v48 = vld [vmem:[%s4521_s0 + $0x10] sm:$0xff]  ;;  %v2488_v49 = vpack.c.bf16 %v958_v45, %v957_v44  ;;  %v927_v50 = vld [vmem:[%s4525_s4 + $0xa0] sm:$0xff] }
   0xd   :  { %2162 = vmatmul.mubr.msk.f32.vlgmr.msra.gmra.mrb[0].mxu0 %vm88_vm0, %v34_v25  ;;  %2485 = vmatprep.subr.bf16.mxu1 %v2484_v36  ;;  %v928_v51 = vld [vmem:[%s4525_s4 + $0xa8] sm:$0xff]  ;;  %v959_v53 = vld [vmem:[%s4525_s4 + $0x1a0] sm:$0xff]  ;;  %v2490_v55 = vpack.c.bf16 %v942_v47, %v941_v46  ;;  %v929_v62 = vld [vmem:[%s4525_s4 + $0xb0] sm:$0xff] }
   0xe   :  { %2178 = vmatmul.mubr.msk.f32.vlgmr.msra.gmra.mrb[0].mxu1 %vm88_vm0, %v34_v25  ;;  %207 = vmatprep.mubr.f32.mxu0 %v2862_v7  ;;  %v960_v54 = vld [vmem:[%s4525_s4 + $0x1a8] sm:$0xff]  ;;  %v2460_v56 = vpack.c.bf16 %v928_v51, %v927_v50  ;;  %v911_v57 = vld [vmem:[%s4525_s4 + $0x20] sm:$0xff]  ;;  %v930_v63 = vld [vmem:[%s4525_s4 + $0xb8] sm:$0xff] }
   0xf   :  { %368 = vmatprep.mubr.f32.mxu1 %v2862_v7  ;;  %2455 = vmatpush3.bf16.msra.mxu0 %v2454_v35  ;;  %v912_v58 = vld [vmem:[%s4525_s4 + $0x28] sm:$0xff]  ;;  %v943_v59 = vld [vmem:[%s4525_s4 + $0x120] sm:$0xff]  ;;  %v2492_v60 = vpack.c.bf16 %v960_v54, %v959_v53  ;;  %v37_v0 = vld [vmem:[%s4521_s0 + $0x18] sm:$0xff] }
  0x10   :  { %2487 = vmatpush3.bf16.msra.mxu1 %v2486_v40  ;;  %2457 = vmatprep.subr.bf16.mxu0 %v2456_v41  ;;  %v944_v61 = vld [vmem:[%s4525_s4 + $0x128] sm:$0xff]  ;;  %v961_v1 = vld [vmem:[%s4525_s4 + $0x1b0] sm:$0xff]  ;;  %v962_v2 = vld [vmem:[%s4525_s4 + $0x1b8] sm:$0xff]  ;;  %v2462_v3 = vpack.c.bf16 %v912_v58, %v911_v57 }
  0x11   :  { %2163 = vmatmul.mubr.msk.f32.gmra.mrb[2].mxu0 %vm88_vm0, %v35_v26  ;;  %2489 = vmatprep.subr.bf16.mxu1 %v2488_v49 }
  0x12   :  { %2179 = vmatmul.mubr.msk.f32.gmra.mrb[2].mxu1 %vm88_vm0, %v35_v26  ;;  %213 = vmatprep.mubr.f32.mxu0 %v2862_v7 }
  0x13   :  { %374 = vmatprep.mubr.f32.mxu1 %v2862_v7  ;;  %2459 = vmatpush3.bf16.msra.mxu0 %v2458_v52 }
  0x15   :  { %2164 = vmatmul.mubr.msk.f32.gmra.mrb[4].mxu0 %vm88_vm0, %v36_v48 }
  0x16   :  { %2180 = vmatmul.mubr.msk.f32.gmra.mrb[4].mxu1 %vm88_vm0, %v36_v48  ;;  %219 = vmatprep.mubr.f32.mxu0 %v2862_v7 }
  0x17   :  { %380 = vmatprep.mubr.f32.mxu1 %v2862_v7 }
  0x18   :  { %15 = vsyncpa [#allocation4], 0  ;;  %2491 = vmatpush3.bf16.msra.mxu1 %v2490_v55  ;;  %2461 = vmatprep.subr.bf16.mxu0 %v2460_v56  ;;  %v2494_v4 = vpack.c.bf16 %v944_v61, %v943_v59  ;;  %v2464_v5 = vpack.c.bf16 %v930_v63, %v929_v62  ;;  %v913_v6 = vld [vmem:[%s4525_s4 + $0x30] sm:$0xff]  ;;  %v914_v8 = vld [vmem:[%s4525_s4 + $0x38] sm:$0xff]  ;;  %v2496_v9 = vpack.c.bf16 %v962_v2, %v961_v1  ;;  %vm2046_vm1 = vcmask 130112  }
  0x19   :  { %2165 = vmatmul.mubr.msk.f32.gmra.mrb[6].mxu0 %vm88_vm0, %v37_v0  ;;  %2493 = vmatprep.subr.bf16.mxu1 %v2492_v60  ;;  %v945_v10 = vld [vmem:[%s4525_s4 + $0x130] sm:$0xff]  ;;  %v946_v11 = vld [vmem:[%s4525_s4 + $0x138] sm:$0xff]  ;;  %v38_v12 = vld [vmem:[%s4521_s0 + $0x20] sm:$0xff]  ;;  %v2466_v13 = vpack.c.bf16 %v914_v8, %v913_v6  ;;  %vm2053_vm2 = vcmask 195712   ;;  %vm2060_vm3 = vcmask 261312   ;;  %vm2067_vm4 = vcmask 326912  }
  0x1a   :  { %2181 = vmatmul.mubr.msk.f32.gmra.mrb[6].mxu1 %vm88_vm0, %v37_v0  ;;  %225 = vmatprep.mubr.f32.mxu0 %v2862_v7  ;;  %v2498_v14 = vpack.c.bf16 %v946_v11, %v945_v10  ;;  %v39_v15 = vld [vmem:[%s4521_s0 + $0x28] sm:$0xff]  ;;  %v40_v16 = vld [vmem:[%s4521_s0 + $0x30] sm:$0xff]  ;;  %v41_v17 = vld [vmem:[%s4521_s0 + $0x38] sm:$0xff]  ;;  %v4531_v10 = vlaneseq  ;;  %vm2074_vm5 = vcmask 392512   ;;  %vm2081_vm6 = vcmask 458112  }
  0x1b   :  { %386 = vmatprep.mubr.f32.mxu1 %v2862_v7  ;;  %2463 = vmatpush3.bf16.msra.mxu0 %v2462_v3  ;;  %v42_v18 = vld [vmem:[%s4521_s0 + $0x40] sm:$0xff]  ;;  %v43_v19 = vld [vmem:[%s4521_s0 + $0x48] sm:$0xff]  ;;  %v44_v20 = vld [vmem:[%s4521_s0 + $0x50] sm:$0xff]  ;;  %vm2088_vm7 = vcmask 523712   ;;  %vm2095_vm8 = vcmask 589312   ;;  %vm2102_vm9 = vcmask 654912  }
  0x1c   :  { %2495 = vmatpush3.bf16.msra.mxu1 %v2494_v4  ;;  %2465 = vmatprep.subr.bf16.mxu0 %v2464_v5  ;;  %v45_v21 = vld [vmem:[%s4521_s0 + $0x58] sm:$0xff]  ;;  %v46_v22 = vld [vmem:[%s4521_s0 + $0x60] sm:$0xff]  ;;  %v47_v23 = vld [vmem:[%s4521_s0 + $0x68] sm:$0xff]  ;;  %v3267_v11 = vshrl.u32 %v4531_v10, 7  ;;  %vm2109_vm10 = vcmask 720512   ;;  %vm2116_vm11 = vcmask 786112  }
  0x1d   :  { %2166 = vmatmul.mubr.msk.f32.gmra.mrb[8].mxu0 %vm88_vm0, %v38_v12  ;;  %2497 = vmatprep.subr.bf16.mxu1 %v2496_v9  ;;  %v48_v24 = vld [vmem:[%s4521_s0 + $0x70] sm:$0xff]  ;;  %v49_v25 = vld [vmem:[%s4521_s0 + $0x78] sm:$0xff]  ;;  %v931_v26 = vld [vmem:[%s4525_s4 + $0xc0] sm:$0xff]  ;;  %vm2123_vm12 = vcmask 851712   ;;  %vm2130_vm13 = vcmask 917312   ;;  %vm2137_vm14 = vcmask 982912  }
  0x1e   :  { %2182 = vmatmul.mubr.msk.f32.gmra.mrb[8].mxu1 %vm88_vm0, %v38_v12  ;;  %231 = vmatprep.mubr.f32.mxu0 %v2862_v7  ;;  %v932_v27 = vld [vmem:[%s4525_s4 + $0xc8] sm:$0xff]  ;;  %v963_v29 = vld [vmem:[%s4525_s4 + $0x1c0] sm:$0xff]  ;;  %v933_v37 = vld [vmem:[%s4525_s4 + $0xd0] sm:$0xff]  ;;  %4545 = vst [vmem:[#allocation6_spill] sm:$0xff] %v3267_v11  ;;  %v3270_v12 = vsub.s32 0, %v3267_v11  ;;  %vm2144_vm15 = vcmask 1048512  }
  0x1f   :  { %392 = vmatprep.mubr.f32.mxu1 %v2862_v7  ;;  %2467 = vmatpush3.bf16.msra.mxu0 %v2466_v13  ;;  %v2468_v28 = vpack.c.bf16 %v932_v27, %v931_v26  ;;  %v915_v30 = vld [vmem:[%s4525_s4 + $0x40] sm:$0xff]  ;;  %v916_v31 = vld [vmem:[%s4525_s4 + $0x48] sm:$0xff]  ;;  %v934_v38 = vld [vmem:[%s4525_s4 + $0xd8] sm:$0xff] }
  0x20   :  { %2499 = vmatpush3.bf16.msra.mxu1 %v2498_v14  ;;  %v947_v33 = vld [vmem:[%s4525_s4 + $0x140] sm:$0xff]  ;;  %v2470_v34 = vpack.c.bf16 %v916_v31, %v915_v30  ;;  %v948_v35 = vld [vmem:[%s4525_s4 + $0x148] sm:$0xff]  ;;  %v965_v39 = vld [vmem:[%s4525_s4 + $0x1d0] sm:$0xff]  ;;  %v2472_v40 = vpack.c.bf16 %v934_v38, %v933_v37  ;;  %4546 = vst [vmem:[#allocation7_spill] sm:$0xff] %v3270_v12  ;;  %v4533_v14 = vsub.s32 2, %v3267_v11 }
  0x21   :  { %2167 = vmatmul.mubr.msk.f32.gmra.mrb[10].mxu0 %vm88_vm0, %v39_v15  ;;  %2469 = vmatprep.subr.bf16.mxu0 %v2468_v28  ;;  %v2502_v36 = vpack.c.bf16 %v948_v35, %v947_v33  ;;  %v917_v41 = vld [vmem:[%s4525_s4 + $0x50] sm:$0xff]  ;;  %v918_v42 = vld [vmem:[%s4525_s4 + $0x58] sm:$0xff]  ;;  %v935_v49 = vld [vmem:[%s4525_s4 + $0xe0] sm:$0xff] }
  0x22   :  { %2183 = vmatmul.mubr.msk.f32.gmra.mrb[10].mxu1 %vm88_vm0, %v39_v15  ;;  %237 = vmatprep.mubr.f32.mxu0 %v2862_v7  ;;  %v966_v43 = vld [vmem:[%s4525_s4 + $0x1d8] sm:$0xff]  ;;  %v2474_v44 = vpack.c.bf16 %v918_v42, %v917_v41  ;;  %v949_v46 = vld [vmem:[%s4525_s4 + $0x150] sm:$0xff]  ;;  %v936_v50 = vld [vmem:[%s4525_s4 + $0xe8] sm:$0xff]  ;;  %v3277_v15 = vsub.s32 1, %v3267_v11 }
  0x23   :  { %398 = vmatprep.mubr.f32.mxu1 %v2862_v7  ;;  %2471 = vmatpush3.bf16.msra.mxu0 %v2470_v34  ;;  %v2504_v45 = vpack.c.bf16 %v966_v43, %v965_v39  ;;  %v950_v47 = vld [vmem:[%s4525_s4 + $0x158] sm:$0xff]  ;;  %v967_v51 = vld [vmem:[%s4525_s4 + $0x1e0] sm:$0xff]  ;;  %v2476_v52 = vpack.c.bf16 %v936_v50, %v935_v49  ;;  %v920_v54 = vld [vmem:[%s4525_s4 + $0x68] sm:$0xff] }
  0x24   :  { %2473 = vmatprep.subr.bf16.mxu0 %v2472_v40  ;;  %v2506_v48 = vpack.c.bf16 %v950_v47, %v949_v46  ;;  %v919_v53 = vld [vmem:[%s4525_s4 + $0x60] sm:$0xff]  ;;  %v968_v55 = vld [vmem:[%s4525_s4 + $0x1e8] sm:$0xff]  ;;  %v937_v61 = vld [vmem:[%s4525_s4 + $0xf0] sm:$0xff]  ;;  %4547 = vst [vmem:[#allocation8_spill] sm:$0xff] %v3277_v15 }
  0x25   :  { %2168 = vmatmul.mubr.msk.f32.gmra.mrb[12].mxu0 %vm88_vm0, %v40_v16  ;;  %v2478_v56 = vpack.c.bf16 %v920_v54, %v919_v53  ;;  %v2508_v57 = vpack.c.bf16 %v968_v55, %v967_v51  ;;  %v951_v58 = vld [vmem:[%s4525_s4 + $0x160] sm:$0xff]  ;;  %v952_v59 = vld [vmem:[%s4525_s4 + $0x168] sm:$0xff]  ;;  %v938_v62 = vld [vmem:[%s4525_s4 + $0xf8] sm:$0xff] }
  0x26   :  { %2184 = vmatmul.mubr.msk.f32.gmra.mrb[12].mxu1 %vm88_vm0, %v40_v16  ;;  %243 = vmatprep.mubr.f32.mxu0 %v2862_v7  ;;  %v2510_v60 = vpack.c.bf16 %v952_v59, %v951_v58  ;;  %v2480_v63 = vpack.c.bf16 %v938_v62, %v937_v61  ;;  %v969_v0 = vld [vmem:[%s4525_s4 + $0x1f0] sm:$0xff]  ;;  %v970_v1 = vld [vmem:[%s4525_s4 + $0x1f8] sm:$0xff]  ;;  %v66_v13 = vld [vmem:[%s4524_s3] sm:$0xf]  ;;  %v4532_v16 = vsub.s32 3, %v3267_v11 }
  0x27   :  { %404 = vmatprep.mubr.f32.mxu1 %v2862_v7  ;;  %2475 = vmatpush3.bf16.msra.mxu0 %v2474_v44  ;;  %v921_v2 = vld [vmem:[%s4525_s4 + $0x70] sm:$0xff]  ;;  %v922_v3 = vld [vmem:[%s4525_s4 + $0x78] sm:$0xff]  ;;  %v2512_v4 = vpack.c.bf16 %v970_v1, %v969_v0 }
  0x28   :  { %2477 = vmatprep.subr.bf16.mxu0 %v2476_v52  ;;  %v953_v5 = vld [vmem:[%s4525_s4 + $0x170] sm:$0xff]  ;;  %v2482_v6 = vpack.c.bf16 %v922_v3, %v921_v2  ;;  %v954_v8 = vld [vmem:[%s4525_s4 + $0x178] sm:$0xff] }
  0x29   :  { %2169 = vmatmul.mubr.msk.f32.gmra.mrb[14].mxu0 %vm88_vm0, %v41_v17  ;;  %v2514_v9 = vpack.c.bf16 %v954_v8, %v953_v5 }
  0x2a   :  { %2185 = vmatmul.mubr.msk.f32.gmra.mrb[14].mxu1 %vm88_vm0, %v41_v17  ;;  %249 = vmatprep.mubr.f32.mxu0 %v2862_v7  ;;  %v3281_v17 = vrot.slane %v66_v13, %v3270_v12 }
  0x2b   :  { %410 = vmatprep.mubr.f32.mxu1 %v2862_v7  ;;  %2479 = vmatpush3.bf16.msra.mxu0 %v2478_v56 }
  0x2c   :  { %2481 = vmatprep.subr.bf16.mxu0 %v2480_v63 }
  0x2d   :  { %2170 = vmatmul.mubr.msk.f32.gmra.mrb[16].mxu0 %vm88_vm0, %v42_v18 }
  0x2e   :  { %2186 = vmatmul.mubr.msk.f32.gmra.mrb[16].mxu1 %vm88_vm0, %v42_v18  ;;  %255 = vmatprep.mubr.f32.mxu0 %v2862_v7  ;;  %v3285_v18 = vrot.slane %v66_v13, %v4533_v14 }
  0x2f   :  { %416 = vmatprep.mubr.f32.mxu1 %v2862_v7  ;;  %2483 = vmatpush3.bf16.msra.mxu0 %v2482_v6 }
  0x31   :  { %2171 = vmatmul.mubr.msk.f32.gmra.mrb[18].mxu0 %vm88_vm0, %v43_v19 }
  0x32   :  { %2187 = vmatmul.mubr.msk.f32.gmra.mrb[18].mxu1 %vm88_vm0, %v43_v19  ;;  %261 = vmatprep.mubr.f32.mxu0 %v2862_v7  ;;  %v3288_v19 = vrot.slane %v66_v13, %v3277_v15 }
  0x33   :  { %422 = vmatprep.mubr.f32.mxu1 %v2862_v7 }
  0x35   :  { %2172 = vmatmul.mubr.msk.f32.gmra.mrb[20].mxu0 %vm88_vm0, %v44_v20 }
  0x36   :  { %2188 = vmatmul.mubr.msk.f32.gmra.mrb[20].mxu1 %vm88_vm0, %v44_v20  ;;  %267 = vmatprep.mubr.f32.mxu0 %v2862_v7  ;;  %v3292_v20 = vrot.slane %v66_v13, %v4532_v16 }
  0x37   :  { %428 = vmatprep.mubr.f32.mxu1 %v2862_v7 }
  0x39   :  { %2173 = vmatmul.mubr.msk.f32.gmra.mrb[22].mxu0 %vm88_vm0, %v45_v21 }
  0x3a   :  { %2189 = vmatmul.mubr.msk.f32.gmra.mrb[22].mxu1 %vm88_vm0, %v45_v21  ;;  %273 = vmatprep.mubr.f32.mxu0 %v2862_v7 }
  0x3b   :  { %434 = vmatprep.mubr.f32.mxu1 %v2862_v7 }
  0x3d   :  { %2174 = vmatmul.mubr.msk.f32.gmra.mrb[24].mxu0 %vm88_vm0, %v46_v22 }
  0x3e   :  { %2190 = vmatmul.mubr.msk.f32.gmra.mrb[24].mxu1 %vm88_vm0, %v46_v22  ;;  %279 = vmatprep.mubr.f32.mxu0 %v2862_v7 }
  0x3f   :  { %440 = vmatprep.mubr.f32.mxu1 %v2862_v7 }
  0x41   :  { %2175 = vmatmul.mubr.msk.f32.gmra.mrb[26].mxu0 %vm88_vm0, %v47_v23 }
  0x42   :  { %2191 = vmatmul.mubr.msk.f32.gmra.mrb[26].mxu1 %vm88_vm0, %v47_v23  ;;  %285 = vmatprep.mubr.f32.mxu0 %v2862_v7 }
  0x43   :  { %446 = vmatprep.mubr.f32.mxu1 %v2862_v7 }
  0x45   :  { %2176 = vmatmul.mubr.msk.f32.gmra.mrb[28].mxu0 %vm88_vm0, %v48_v24 }
  0x46   :  { %2192 = vmatmul.mubr.msk.f32.gmra.mrb[28].mxu1 %vm88_vm0, %v48_v24  ;;  %291 = vmatprep.mubr.f32.mxu0 %v2862_v7 }
  0x47   :  { %452 = vmatprep.mubr.f32.mxu1 %v2862_v7  ;;  %v964_v7 = vld [vmem:[%s4525_s4 + $0x1c8] sm:$0xff] }
  0x48   :  { %v2500_v32 = vpack.c.bf16 %v964_v7, %v963_v29 }
  0x49   :  { %2177 = vmatmul.mubr.msk.f32.gmra.mrb[30].mxu0 %vm88_vm0, %v49_v25 }
  0x4a   :  { %2193 = vmatmul.mubr.msk.f32.gmra.mrb[30].mxu1 %vm88_vm0, %v49_v25  ;;  %2501 = vmatprep.subr.bf16.mxu1 %v2500_v32 }
  0x4b   :  { %2503 = vmatpush3.bf16.msra.mxu1 %v2502_v36 }
  0x4c   :  { %2505 = vmatprep.subr.bf16.mxu1 %v2504_v45 }
  0x4f   :  { %2507 = vmatpush3.bf16.msra.mxu1 %v2506_v48 }
  0x50   :  { %2509 = vmatprep.subr.bf16.mxu1 %v2508_v57 }
  0x53   :  { %2511 = vmatpush3.bf16.msra.mxu1 %v2510_v60 }
  0x54   :  { %2513 = vmatprep.subr.bf16.mxu1 %v2512_v4 }
  0x57   :  { %2515 = vmatpush3.bf16.msra.mxu1 %v2514_v9 }
  0xe0   :  { %v203_v21 = vpop.f32.mrb[0].mxu0 }
  0xe1   :  { %v3295_v22 = vadd.f32 %v203_v21, %v3281_v17  ;;  %v364_v23 = vpop.f32.mrb[0].mxu1  ;;  %v205_v24 = vpop.f32.mrb[1].mxu0 }
  0xe2   :  { %v3298_v25 = vadd.f32 %v364_v23, %v3285_v18  ;;  %v3301_v26 = vadd.f32 %v205_v24, %v3288_v19  ;;  %v366_v27 = vpop.f32.mrb[1].mxu1 }
  0xe3   :  { %v2194_v28 = vmul.f32 -1.442695, %v3295_v22  ;;  %v3305_v29 = vadd.f32 %v366_v27, %v3292_v20 }
  0xe4   :  { %v2196_v7 = vmul.f32 -1.442695, %v3298_v25  ;;  %v2195_v30 = vmul.f32 -1.442695, %v3301_v26  ;;  %v209_v31 = vpop.f32.mrb[2].mxu0 }
  0xe5   :  { %2518 = vpow2.f32 %v2194_v28  ;;  %v2197_v32 = vmul.f32 -1.442695, %v3305_v29  ;;  %v3311_v33 = vadd.f32 %v209_v31, %v3281_v17  ;;  %v370_v34 = vpop.f32.mrb[2].mxu1  ;;  %v211_v35 = vpop.f32.mrb[3].mxu0 }
  0xe6   :  { %2520 = vpow2.f32 %v2196_v7  ;;  %v3314_v36 = vadd.f32 %v370_v34, %v3285_v18  ;;  %v3317_v37 = vadd.f32 %v211_v35, %v3288_v19  ;;  %v372_v38 = vpop.f32.mrb[3].mxu1 }
  0xe7   :  { %2522 = vpow2.f32 %v2195_v30  ;;  %v2198_v39 = vmul.f32 -1.442695, %v3311_v33  ;;  %v3321_v40 = vadd.f32 %v372_v38, %v3292_v20 }
  0xe8   :  { %2524 = vpow2.f32 %v2197_v32  ;;  %v2200_v41 = vmul.f32 -1.442695, %v3314_v36  ;;  %v2199_v42 = vmul.f32 -1.442695, %v3317_v37  ;;  %v215_v43 = vpop.f32.mrb[4].mxu0 }
  0xe9   :  { %2526 = vpow2.f32 %v2198_v39  ;;  %v2201_v44 = vmul.f32 -1.442695, %v3321_v40  ;;  %v3327_v45 = vadd.f32 %v215_v43, %v3281_v17  ;;  %v376_v46 = vpop.f32.mrb[4].mxu1  ;;  %v217_v47 = vpop.f32.mrb[5].mxu0 }
  0xea   :  { %2528 = vpow2.f32 %v2200_v41  ;;  %v3330_v48 = vadd.f32 %v376_v46, %v3285_v18  ;;  %v3333_v49 = vadd.f32 %v217_v47, %v3288_v19  ;;  %v378_v50 = vpop.f32.mrb[5].mxu1 }
  0xeb   :  { %2530 = vpow2.f32 %v2199_v42  ;;  %v2202_v51 = vmul.f32 -1.442695, %v3327_v45  ;;  %v3337_v52 = vadd.f32 %v378_v50, %v3292_v20 }
  0xec   :  { %2532 = vpow2.f32 %v2201_v44  ;;  %v2204_v53 = vmul.f32 -1.442695, %v3330_v48  ;;  %v2203_v54 = vmul.f32 -1.442695, %v3333_v49  ;;  %v221_v55 = vpop.f32.mrb[6].mxu0 }
  0xed   :  { %2534 = vpow2.f32 %v2202_v51  ;;  %v2205_v56 = vmul.f32 -1.442695, %v3337_v52  ;;  %v3343_v57 = vadd.f32 %v221_v55, %v3281_v17  ;;  %v382_v58 = vpop.f32.mrb[6].mxu1  ;;  %v223_v59 = vpop.f32.mrb[7].mxu0 }
  0xee   :  { %2536 = vpow2.f32 %v2204_v53  ;;  %v384_v60 = vpop.f32.mrb[7].mxu1  ;;  %v3347_v41 = vadd.f32 %v382_v58, %v3285_v18  ;;  %v3350_v44 = vadd.f32 %v223_v59, %v3288_v19 }
  0xef   :  { %v2519_v61 = vpop.eup %2518  ;;  %2538 = vpow2.f32 %v2203_v54  ;;  %v2206_v62 = vmul.f32 -1.442695, %v3343_v57  ;;  %v3353_v51 = vadd.f32 %v384_v60, %v3292_v20 }
  0xf0   :  { %v2521_v63 = vpop.eup %2520  ;;  %v651_v0 = vadd.f32 1.0, %v2519_v61  ;;  %2540 = vpow2.f32 %v2205_v56  ;;  %v227_v1 = vpop.f32.mrb[8].mxu0  ;;  %v2208_v60 = vmul.f32 -1.442695, %v3347_v41 }
  0xf1   :  { %v2523_v2 = vpop.eup %2522  ;;  %v653_v3 = vadd.f32 1.0, %v2521_v63  ;;  %2542 = vpow2.f32 %v2206_v62  ;;  %v388_v4 = vpop.f32.mrb[8].mxu1  ;;  %v3358_v58 = vadd.f32 %v227_v1, %v3281_v17 }
  0xf2   :  { %v229_v5 = vpop.f32.mrb[9].mxu0  ;;  %v2525_v6 = vpop.eup %2524  ;;  %2544 = vrcp.f32 %v651_v0  ;;  %v652_v8 = vadd.f32 1.0, %v2523_v2  ;;  %v3361_v61 = vadd.f32 %v388_v4, %v3285_v18  ;;  %v2209_v4 = vmul.f32 -1.442695, %v3353_v51 }
  0xf3   :  { %v390_v9 = vpop.f32.mrb[9].mxu1  ;;  %v2527_v13 = vpop.eup %2526  ;;  %2546 = vrcp.f32 %v653_v3  ;;  %v654_v21 = vadd.f32 1.0, %v2525_v6  ;;  %v3367_v0 = vadd.f32 %v229_v5, %v3288_v19  ;;  %v2207_v6 = vmul.f32 -1.442695, %v3350_v44 }
  0xf4   :  { %v2529_v23 = vpop.eup %2528  ;;  %2548 = vrcp.f32 %v652_v8  ;;  %v655_v24 = vadd.f32 1.0, %v2527_v13  ;;  %v233_v27 = vpop.f32.mrb[10].mxu0  ;;  %v3374_v13 = vadd.f32 %v390_v9, %v3292_v20 }
  0xf5   :  { %v2531_v28 = vpop.eup %2530  ;;  %2550 = vrcp.f32 %v654_v21  ;;  %v657_v7 = vadd.f32 1.0, %v2529_v23  ;;  %v394_v30 = vpop.f32.mrb[10].mxu1  ;;  %v2211_v9 = vmul.f32 -1.442695, %v3367_v0 }
  0xf6   :  { %v235_v31 = vpop.f32.mrb[11].mxu0  ;;  %v2533_v32 = vpop.eup %2532  ;;  %2552 = vrcp.f32 %v655_v24  ;;  %v656_v34 = vadd.f32 1.0, %v2531_v28  ;;  %v2210_v24 = vmul.f32 -1.442695, %v3358_v58  ;;  %v2212_v28 = vmul.f32 -1.442695, %v3361_v61 }
  0xf7   :  { %v396_v35 = vpop.f32.mrb[11].mxu1  ;;  %v2535_v38 = vpop.eup %2534  ;;  %2554 = vrcp.f32 %v657_v7  ;;  %v658_v39 = vadd.f32 1.0, %v2533_v32  ;;  %v3383_v7 = vadd.f32 %v233_v27, %v3281_v17  ;;  %v3395_v27 = vadd.f32 %v235_v31, %v3288_v19 }
  0xf8   :  { %v2537_v42 = vpop.eup %2536  ;;  %2556 = vrcp.f32 %v656_v34  ;;  %v659_v43 = vadd.f32 1.0, %v2535_v38  ;;  %v239_v46 = vpop.f32.mrb[12].mxu0 }
  0xf9   :  { %v2539_v47 = vpop.eup %2538  ;;  %2558 = vrcp.f32 %v658_v39  ;;  %v661_v50 = vadd.f32 1.0, %v2537_v42  ;;  %v400_v53 = vpop.f32.mrb[12].mxu1  ;;  %v3390_v39 = vadd.f32 %v394_v30, %v3285_v18  ;;  %v3402_v30 = vadd.f32 %v396_v35, %v3292_v20 }
  0xfa   :  { %v3355_v54 = vpop.f32.mrb[13].mxu0  ;;  %v2541_v55 = vpop.eup %2540  ;;  %2560 = vrcp.f32 %v659_v43  ;;  %v660_v56 = vadd.f32 1.0, %v2539_v47  ;;  %v2214_v31 = vmul.f32 -1.442695, %v3383_v7 }
  0xfb   :  { %v3363_v59 = vpop.f32.mrb[13].mxu1  ;;  %v2543_v62 = vpop.eup %2542  ;;  %2562 = vrcp.f32 %v661_v50  ;;  %v662_v63 = vadd.f32 1.0, %v2541_v55 }
  0xfc   :  { %v2545_v2 = vpop.eup %2544  ;;  %2564 = vrcp.f32 %v660_v56  ;;  %v663_v3 = vadd.f32 1.0, %v2543_v62  ;;  %v3370_v1 = vpop.f32.mrb[14].mxu0  ;;  %v2213_v56 = vmul.f32 -1.442695, %v3374_v13 }
  0xfd   :  { %v2547_v8 = vpop.eup %2546  ;;  %2566 = vrcp.f32 %v662_v63  ;;  %v3376_v21 = vpop.f32.mrb[14].mxu1  ;;  %v843_v43 = vmul.f32 %v2545_v2, %v3295_v22  ;;  %v3410_v63 = vadd.f32 %v239_v46, %v3281_v17  ;;  %v2216_v2 = vmul.f32 -1.442695, %v3390_v39 }
  0xfe   :  { %v3378_v23 = vpop.f32.mrb[15].mxu0  ;;  %v2549_v5 = vpop.eup %2548  ;;  %2568 = vrcp.f32 %v663_v3  ;;  %v3417_v3 = vadd.f32 %v400_v53, %v3285_v18 }
  0xff   :  { %v3385_v32 = vpop.f32.mrb[15].mxu1  ;;  %v2551_v34 = vpop.eup %2550  ;;  %v844_v38 = vmul.f32 %v2549_v5, %v3301_v26  ;;  %2570 = vpow2.f32 %v2208_v60  ;;  %v845_v26 = vmul.f32 %v2547_v8, %v3298_v25 }
 0x100   :  { %v2553_v42 = vpop.eup %2552  ;;  %v846_v47 = vmul.f32 %v2551_v34, %v3305_v29  ;;  %2572 = vpow2.f32 %v2207_v6  ;;  %v3397_v50 = vpop.f32.mrb[16].mxu0 }
 0x101   :  { %v2555_v55 = vpop.eup %2554  ;;  %2574 = vpow2.f32 %v2209_v4  ;;  %v3404_v62 = vpop.f32.mrb[16].mxu1  ;;  %1042 = vmatprep.mubr.f32.mxu0 %v844_v38  ;;  %v847_v8 = vmul.f32 %v2553_v42, %v3311_v33  ;;  %v2215_v4 = vmul.f32 -1.442695, %v3395_v27  ;;  %v2218_v33 = vmul.f32 -1.442695, %v3410_v63 }
 0x102   :  { %v3406_v22 = vpop.f32.mrb[17].mxu0  ;;  %v2557_v29 = vpop.eup %2556  ;;  %2576 = vpow2.f32 %v2210_v24  ;;  %1187 = vmatprep.mubr.f32.mxu1 %v846_v47  ;;  %1043 = vmatmul.mubr.f32.vlgmr.msra.gmra.mrb[32].mxu0 %v843_v43  ;;  %v2220_v47 = vmul.f32 -1.442695, %v3417_v3  ;;  %v3513_v16 = vadd.f32 %v3397_v50, %v3281_v17 }
 0x103   :  { %v3412_v25 = vpop.f32.mrb[17].mxu1  ;;  %v2559_v60 = vpop.eup %2558  ;;  %v848_v35 = vmul.f32 %v2557_v29, %v3317_v37  ;;  %2578 = vpow2.f32 %v2212_v28  ;;  %1188 = vmatmul.mubr.f32.vlgmr.msra.gmra.mrb[32].mxu1 %v845_v26  ;;  %v849_v37 = vmul.f32 %v2555_v55, %v3314_v36  ;;  %v2217_v28 = vmul.f32 -1.442695, %v3402_v30 }
 0x104   :  { %v2561_v6 = vpop.eup %2560  ;;  %v850_v46 = vmul.f32 %v2559_v60, %v3321_v40  ;;  %2580 = vpow2.f32 %v2211_v9  ;;  %v3422_v5 = vpop.f32.mrb[18].mxu0  ;;  %v3431_v40 = vadd.f32 %v3355_v54, %v3288_v19  ;;  %v3447_v29 = vadd.f32 %v3363_v59, %v3292_v20 }
 0x105   :  { %v2563_v24 = vpop.eup %2562  ;;  %2582 = vpow2.f32 %v2213_v56  ;;  %v418_v34 = vpop.f32.mrb[18].mxu1  ;;  %1047 = vmatprep.mubr.f32.mxu0 %v848_v35  ;;  %v851_v54 = vmul.f32 %v2561_v6, %v3327_v45 }
 0x106   :  { %v3426_v53 = vpop.f32.mrb[19].mxu0  ;;  %v2565_v38 = vpop.eup %2564  ;;  %2584 = vpow2.f32 %v2214_v31  ;;  %v3434_v9 = vadd.f32 %v418_v34, %v3285_v18  ;;  %1192 = vmatprep.mubr.f32.mxu1 %v850_v46  ;;  %1048 = vmatmul.mubr.f32.gmra.mrb[34].mxu0 %v847_v8  ;;  %v853_v60 = vmul.f32 %v2563_v24, %v3330_v48  ;;  %v3460_v24 = vmul.f32 -1.442695, %v3431_v40 }
 0x107   :  { %v420_v36 = vpop.f32.mrb[19].mxu1  ;;  %v2567_v42 = vpop.eup %2566  ;;  %v852_v43 = vmul.f32 %v2565_v38, %v3333_v49  ;;  %2586 = vpow2.f32 %v2216_v2  ;;  %1193 = vmatmul.mubr.f32.gmra.mrb[34].mxu1 %v849_v37  ;;  %v3466_v38 = vmul.f32 -1.442695, %v3447_v29 }
 0x108   :  { %v3439_v55 = vadd.f32 %v420_v36, %v3292_v20  ;;  %v3441_v26 = vpop.eup %2568  ;;  %v854_v56 = vmul.f32 %v2567_v42, %v3337_v52  ;;  %2588 = vpow2.f32 %v2215_v4  ;;  %v263_v31 = vpop.f32.mrb[20].mxu0 }
 0x109   :  { %v2571_v49 = vpop.eup %2570  ;;  %2590 = vpow2.f32 %v2217_v28  ;;  %v3451_v35 = vadd.f32 %v263_v31, %v3281_v17  ;;  %v424_v2 = vpop.f32.mrb[20].mxu1  ;;  %1052 = vmatprep.mubr.f32.mxu0 %v852_v43 }
 0x10a   :  { %v265_v8 = vpop.f32.mrb[21].mxu0  ;;  %v2573_v46 = vpop.eup %2572  ;;  %v665_v45 = vadd.f32 1.0, %v2571_v49  ;;  %2592 = vpow2.f32 %v2218_v33  ;;  %v3454_v52 = vadd.f32 %v424_v2, %v3285_v18  ;;  %1197 = vmatprep.mubr.f32.mxu1 %v854_v56  ;;  %1053 = vmatmul.mubr.f32.gmra.mrb[36].mxu0 %v851_v54  ;;  %v3470_v33 = vadd.f32 %v3370_v1, %v3281_v17 }
 0x10b   :  { %v3457_v59 = vadd.f32 %v265_v8, %v3288_v19  ;;  %v426_v6 = vpop.f32.mrb[21].mxu1  ;;  %v2575_v48 = vpop.eup %2574  ;;  %v664_v4 = vadd.f32 1.0, %v2573_v46  ;;  %2594 = vpow2.f32 %v2220_v47  ;;  %1198 = vmatmul.mubr.f32.gmra.mrb[36].mxu1 %v853_v60  ;;  %v3474_v47 = vadd.f32 %v3376_v21, %v3285_v18 }
 0x10c   :  { %v3463_v37 = vadd.f32 %v426_v6, %v3292_v20  ;;  %v2577_v28 = vpop.eup %2576  ;;  %2596 = vrcp.f32 %v665_v45  ;;  %v666_v34 = vadd.f32 1.0, %v2575_v48  ;;  %v269_v36 = vpop.f32.mrb[22].mxu0  ;;  %v3487_v21 = vadd.f32 %v3378_v23, %v3288_v19 }
 0x10d   :  { %v2579_v42 = vpop.eup %2578  ;;  %2598 = vrcp.f32 %v664_v4  ;;  %v667_v43 = vadd.f32 1.0, %v2577_v28  ;;  %v3477_v54 = vadd.f32 %v269_v36, %v3281_v17  ;;  %v430_v56 = vpop.f32.mrb[22].mxu1  ;;  %v3493_v28 = vmul.f32 -1.442695, %v3470_v33 }
 0x10e   :  { %v271_v31 = vpop.f32.mrb[23].mxu0  ;;  %v2581_v49 = vpop.eup %2580  ;;  %2600 = vrcp.f32 %v666_v34  ;;  %v669_v60 = vadd.f32 1.0, %v2579_v42  ;;  %v3480_v2 = vadd.f32 %v430_v56, %v3285_v18  ;;  %v3497_v34 = vadd.f32 %v3385_v32, %v3292_v20 }
 0x10f   :  { %v3483_v1 = vadd.f32 %v271_v31, %v3288_v19  ;;  %v432_v8 = vpop.f32.mrb[23].mxu1  ;;  %v2583_v46 = vpop.eup %2582  ;;  %2602 = vrcp.f32 %v667_v43  ;;  %v668_v45 = vadd.f32 1.0, %v2581_v49  ;;  %v3500_v23 = vmul.f32 -1.442695, %v3474_v47 }
 0x110   :  { %v3490_v6 = vadd.f32 %v432_v8, %v3292_v20  ;;  %v2585_v48 = vpop.eup %2584  ;;  %2604 = vrcp.f32 %v669_v60  ;;  %v670_v4 = vadd.f32 1.0, %v2583_v46  ;;  %v275_v36 = vpop.f32.mrb[24].mxu0 }
 0x111   :  { %v2587_v42 = vpop.eup %2586  ;;  %2606 = vrcp.f32 %v668_v45  ;;  %v671_v43 = vadd.f32 1.0, %v2585_v48  ;;  %v3503_v56 = vadd.f32 %v275_v36, %v3281_v17  ;;  %v436_v31 = vpop.f32.mrb[24].mxu1 }
 0x112   :  { %v277_v49 = vpop.f32.mrb[25].mxu0  ;;  %v2589_v60 = vpop.eup %2588  ;;  %2608 = vrcp.f32 %v670_v4  ;;  %v673_v8 = vadd.f32 1.0, %v2587_v42  ;;  %v3506_v46 = vadd.f32 %v436_v31, %v3285_v18  ;;  %v2223_v42 = vmul.f32 -1.442695, %v3487_v21 }
 0x113   :  { %v3509_v32 = vadd.f32 %v277_v49, %v3288_v19  ;;  %v438_v10 = vpop.f32.mrb[25].mxu1  ;;  %v2591_v45 = vpop.eup %2590  ;;  %2610 = vrcp.f32 %v671_v43  ;;  %v672_v48 = vadd.f32 1.0, %v2589_v60  ;;  %v3521_v31 = vadd.f32 %v3404_v62, %v3285_v18 }
 0x114   :  { %v3516_v36 = vadd.f32 %v438_v10, %v3292_v20  ;;  %v2593_v14 = vpop.eup %2592  ;;  %2612 = vrcp.f32 %v673_v8  ;;  %v674_v4 = vadd.f32 1.0, %v2591_v45  ;;  %v281_v49 = vpop.f32.mrb[26].mxu0  ;;  %v2225_v60 = vmul.f32 -1.442695, %v3497_v34 }
 0x115   :  { %4548 = vst [vmem:[#allocation9_spill] sm:$0xff] %v3509_v32  ;;  %v2595_v11 = vpop.eup %2594  ;;  %2614 = vrcp.f32 %v672_v48  ;;  %v675_v43 = vadd.f32 1.0, %v2593_v14  ;;  %v3525_v50 = vadd.f32 %v281_v49, %v3281_v17  ;;  %v442_v10 = vpop.f32.mrb[26].mxu1  ;;  %v2226_v14 = vmul.f32 -1.442695, %v3513_v16 }
 0x116   :  { %4549 = vst [vmem:[#allocation10_spill] sm:$0xff] %v3516_v36  ;;  %v283_v15 = vpop.f32.mrb[27].mxu0  ;;  %v2597_v12 = vpop.eup %2596  ;;  %2616 = vrcp.f32 %v674_v4  ;;  %v677_v8 = vadd.f32 1.0, %v2595_v11  ;;  %v3528_v45 = vadd.f32 %v442_v10, %v3285_v18  ;;  %v3536_v48 = vadd.f32 %v3406_v22, %v3288_v19 }
 0x117   :  { %v3531_v62 = vadd.f32 %v283_v15, %v3288_v19  ;;  %v444_v36 = vpop.f32.mrb[27].mxu1  ;;  %v2599_v32 = vpop.eup %2598  ;;  %2618 = vrcp.f32 %v675_v43  ;;  %v2228_v10 = vmul.f32 -1.442695, %v3521_v31  ;;  %v3545_v15 = vadd.f32 %v3412_v25, %v3292_v20 }
 0x118   :  { %4550 = vst [vmem:[#allocation11_spill] sm:$0xff] %v3528_v45  ;;  %v3539_v49 = vadd.f32 %v444_v36, %v3292_v20  ;;  %v2601_v4 = vpop.eup %2600  ;;  %v856_v11 = vmul.f32 %v2599_v32, %v3350_v44  ;;  %2620 = vrcp.f32 %v677_v8  ;;  %v287_v43 = vpop.f32.mrb[28].mxu0  ;;  %v855_v45 = vmul.f32 %v3441_v26, %v3343_v57 }
 0x119   :  { %4551 = vst [vmem:[#allocation12_spill] sm:$0xff] %v3531_v62  ;;  %v2603_v62 = vpop.eup %2602  ;;  %v858_v22 = vmul.f32 %v2601_v4, %v3353_v51  ;;  %2622 = vpow2.f32 %v3460_v24  ;;  %v3552_v36 = vadd.f32 %v287_v43, %v3281_v17  ;;  %v448_v44 = vpop.f32.mrb[28].mxu1  ;;  %v2227_v24 = vmul.f32 -1.442695, %v3536_v48 }
 0x11a   :  { %4552 = vst [vmem:[#allocation13_spill] sm:$0xff] %v3539_v49  ;;  %v289_v32 = vpop.f32.mrb[29].mxu0  ;;  %v2605_v8 = vpop.eup %2604  ;;  %v857_v49 = vmul.f32 %v2597_v12, %v3347_v41  ;;  %2624 = vpow2.f32 %v3466_v38  ;;  %1057 = vmatprep.mubr.f32.mxu0 %v856_v11  ;;  %v3557_v25 = vadd.f32 %v448_v44, %v3285_v18  ;;  %v3566_v4 = vadd.f32 %v3422_v5, %v3281_v17 }
 0x11b   :  { %v3560_v57 = vadd.f32 %v289_v32, %v3288_v19  ;;  %v450_v51 = vpop.f32.mrb[29].mxu1  ;;  %v2607_v26 = vpop.eup %2606  ;;  %2626 = vpow2.f32 %v3493_v28  ;;  %1202 = vmatprep.mubr.f32.mxu1 %v858_v22  ;;  %1058 = vmatmul.mubr.f32.gmra.mrb[38].mxu0 %v855_v45  ;;  %v2229_v11 = vmul.f32 -1.442695, %v3545_v15  ;;  %v3576_v28 = vadd.f32 %v3426_v53, %v3288_v19 }
 0x11c   :  { %v3569_v12 = vadd.f32 %v450_v51, %v3292_v20  ;;  %v2609_v41 = vpop.eup %2608  ;;  %v860_v38 = vmul.f32 %v2607_v26, %v3367_v0  ;;  %2628 = vpow2.f32 %v3500_v23  ;;  %1203 = vmatmul.mubr.f32.gmra.mrb[38].mxu1 %v857_v49  ;;  %v293_v43 = vpop.f32.mrb[30].mxu0  ;;  %v859_v22 = vmul.f32 %v2603_v62, %v3358_v58 }
 0x11d   :  { %v2611_v5 = vpop.eup %2610  ;;  %v862_v45 = vmul.f32 %v2609_v41, %v3374_v13  ;;  %2630 = vpow2.f32 %v2223_v42  ;;  %v3581_v44 = vadd.f32 %v293_v43, %v3281_v17  ;;  %v454_v0 = vpop.f32.mrb[30].mxu1  ;;  %v861_v51 = vmul.f32 %v2605_v8, %v3361_v61 }
 0x11e   :  { %v295_v32 = vpop.f32.mrb[31].mxu0  ;;  %v2613_v23 = vpop.eup %2612  ;;  %2632 = vpow2.f32 %v2225_v60  ;;  %1062 = vmatprep.mubr.f32.mxu0 %v860_v38  ;;  %v3585_v53 = vadd.f32 %v454_v0, %v3285_v18  ;;  %v2230_v13 = vmul.f32 -1.442695, %v3566_v4  ;;  %v2232_v18 = vmul.f32 -1.442695, %v3434_v9 }
 0x11f   :  { %v3588_v49 = vadd.f32 %v295_v32, %v3288_v19  ;;  %v456_v58 = vpop.f32.mrb[31].mxu1  ;;  %v2615_v62 = vpop.eup %2614  ;;  %2634 = vpow2.f32 %v2226_v14  ;;  %1207 = vmatprep.mubr.f32.mxu1 %v862_v45  ;;  %1063 = vmatmul.mubr.f32.gmra.mrb[40].mxu0 %v859_v22  ;;  %v863_v19 = vmul.f32 %v2611_v5, %v3383_v7  ;;  %v2231_v14 = vmul.f32 -1.442695, %v3576_v28 }
 0x120   :  { %v3592_v17 = vadd.f32 %v456_v58, %v3292_v20  ;;  %v2617_v42 = vpop.eup %2616  ;;  %v864_v61 = vmul.f32 %v2615_v62, %v3395_v27  ;;  %2636 = vpow2.f32 %v2228_v10  ;;  %1208 = vmatmul.mubr.f32.gmra.mrb[40].mxu1 %v861_v51  ;;  %v865_v41 = vmul.f32 %v2613_v23, %v3390_v39 }
 0x121   :  { %v2619_v60 = vpop.eup %2618  ;;  %v866_v8 = vmul.f32 %v2617_v42, %v3402_v30  ;;  %2638 = vpow2.f32 %v2227_v24 }
 0x122   :  { %v2621_v26 = vpop.eup %2620  ;;  %2640 = vpow2.f32 %v2229_v11  ;;  %1067 = vmatprep.mubr.f32.mxu0 %v864_v61 }
 0x123   :  { %v2623_v20 = vpop.eup %2622  ;;  %2642 = vpow2.f32 %v2230_v13  ;;  %1212 = vmatprep.mubr.f32.mxu1 %v866_v8  ;;  %1068 = vmatmul.mubr.f32.gmra.mrb[42].mxu0 %v863_v19 }
 0x124   :  { %v2625_v27 = vpop.eup %2624  ;;  %v676_v10 = vadd.f32 1.0, %v2623_v20  ;;  %2644 = vpow2.f32 %v2232_v18  ;;  %1213 = vmatmul.mubr.f32.gmra.mrb[42].mxu1 %v865_v41 }
 0x125   :  { %v2627_v38 = vpop.eup %2626  ;;  %v678_v7 = vadd.f32 1.0, %v2625_v27  ;;  %2646 = vpow2.f32 %v2231_v14  ;;  %v2233_v14 = vmul.f32 -1.442695, %v3439_v55  ;;  %v2234_v27 = vmul.f32 -1.442695, %v3451_v35 }
 0x126   :  { %v2629_v30 = vpop.eup %2628  ;;  %2648 = vrcp.f32 %v676_v10  ;;  %v679_v24 = vadd.f32 1.0, %v2627_v38 }
 0x127   :  { %v2631_v43 = vpop.eup %2630  ;;  %2650 = vrcp.f32 %v678_v7  ;;  %v681_v5 = vadd.f32 1.0, %v2629_v30  ;;  %v2236_v7 = vmul.f32 -1.442695, %v3454_v52 }
 0x128   :  { %v2633_v39 = vpop.eup %2632  ;;  %2652 = vrcp.f32 %v679_v24  ;;  %v680_v11 = vadd.f32 1.0, %v2631_v43  ;;  %v867_v24 = vmul.f32 %v2619_v60, %v3410_v63 }
 0x129   :  { %v2635_v22 = vpop.eup %2634  ;;  %2654 = vrcp.f32 %v681_v5  ;;  %v682_v45 = vadd.f32 1.0, %v2633_v39  ;;  %v2235_v5 = vmul.f32 -1.442695, %v3457_v59 }
 0x12a   :  { %v2637_v0 = vpop.eup %2636  ;;  %2656 = vrcp.f32 %v680_v11  ;;  %v683_v32 = vadd.f32 1.0, %v2635_v22  ;;  %v869_v11 = vmul.f32 %v2621_v26, %v3417_v3  ;;  %v2237_v22 = vmul.f32 -1.442695, %v3463_v37 }
 0x12b   :  { %v2639_v23 = vpop.eup %2638  ;;  %2658 = vrcp.f32 %v682_v45  ;;  %v685_v51 = vadd.f32 1.0, %v2637_v0 }
 0x12c   :  { %v2641_v58 = vpop.eup %2640  ;;  %2660 = vrcp.f32 %v683_v32  ;;  %v684_v62 = vadd.f32 1.0, %v2639_v23  ;;  %v2239_v32 = vmul.f32 -1.442695, %v3483_v1 }
 0x12d   :  { %v2643_v13 = vpop.eup %2642  ;;  %2662 = vrcp.f32 %v685_v51  ;;  %v686_v42 = vadd.f32 1.0, %v2641_v58  ;;  %v2241_v58 = vmul.f32 -1.442695, %v3490_v6 }
 0x12e   :  { %v2645_v61 = vpop.eup %2644  ;;  %2664 = vrcp.f32 %v684_v62  ;;  %v687_v18 = vadd.f32 1.0, %v2643_v13  ;;  %v2242_v62 = vmul.f32 -1.442695, %v3503_v56 }
 0x12f   :  { %v2647_v19 = vpop.eup %2646  ;;  %2666 = vrcp.f32 %v686_v42  ;;  %v689_v8 = vadd.f32 1.0, %v2645_v61 }
 0x130   :  { %v2649_v41 = vpop.eup %2648  ;;  %2668 = vrcp.f32 %v687_v18  ;;  %v688_v20 = vadd.f32 1.0, %v2647_v19  ;;  %v4553_v18 = vld [vmem:[#allocation9_spill] sm:$0xff] }
 0x131   :  { %v2651_v10 = vpop.eup %2650  ;;  %v868_v38 = vmul.f32 %v2649_v41, %v3431_v40  ;;  %2670 = vrcp.f32 %v689_v8  ;;  %v2238_v40 = vmul.f32 -1.442695, %v3477_v54  ;;  %v2243_v19 = vmul.f32 -1.442695, %v4553_v18  ;;  %v4554_v41 = vld [vmem:[#allocation10_spill] sm:$0xff] }
 0x132   :  { %v2653_v30 = vpop.eup %2652  ;;  %v870_v43 = vmul.f32 %v2651_v10, %v3447_v29  ;;  %2672 = vrcp.f32 %v688_v20  ;;  %v2240_v29 = vmul.f32 -1.442695, %v3480_v2  ;;  %v2245_v20 = vmul.f32 -1.442695, %v4554_v41 }
 0x133   :  { %v2655_v39 = vpop.eup %2654  ;;  %2674 = vpow2.f32 %v2233_v14  ;;  %1072 = vmatprep.mubr.f32.mxu0 %v868_v38  ;;  %v871_v3 = vmul.f32 %v2653_v30, %v3470_v33 }
 0x134   :  { %v2657_v45 = vpop.eup %2656  ;;  %2676 = vpow2.f32 %v2234_v27  ;;  %1217 = vmatprep.mubr.f32.mxu1 %v870_v43  ;;  %1073 = vmatmul.mubr.f32.gmra.mrb[44].mxu0 %v867_v24  ;;  %v873_v51 = vmul.f32 %v2655_v39, %v3474_v47 }
 0x135   :  { %v2659_v0 = vpop.eup %2658  ;;  %v872_v63 = vmul.f32 %v2657_v45, %v3487_v21  ;;  %2678 = vpow2.f32 %v2236_v7  ;;  %1218 = vmatmul.mubr.f32.gmra.mrb[44].mxu1 %v869_v11 }
 0x136   :  { %v2661_v60 = vpop.eup %2660  ;;  %v874_v26 = vmul.f32 %v2659_v0, %v3497_v34  ;;  %2680 = vpow2.f32 %v2235_v5  ;;  %v2244_v34 = vmul.f32 -1.442695, %v3506_v46 }
 0x137   :  { %v2663_v23 = vpop.eup %2662  ;;  %2682 = vpow2.f32 %v2237_v22  ;;  %1077 = vmatprep.mubr.f32.mxu0 %v872_v63  ;;  %v875_v47 = vmul.f32 %v2661_v60, %v3513_v16 }
 0x138   :  { %v2665_v21 = vpop.eup %2664  ;;  %2684 = vpow2.f32 %v2238_v40  ;;  %1222 = vmatprep.mubr.f32.mxu1 %v874_v26  ;;  %1078 = vmatmul.mubr.f32.gmra.mrb[46].mxu0 %v871_v3  ;;  %v877_v14 = vmul.f32 %v2663_v23, %v3521_v31 }
 0x139   :  { %v2667_v13 = vpop.eup %2666  ;;  %v876_v33 = vmul.f32 %v2665_v21, %v3536_v48  ;;  %2686 = vpow2.f32 %v2240_v29  ;;  %1223 = vmatmul.mubr.f32.gmra.mrb[46].mxu1 %v873_v51 }
 0x13a   :  { %v2669_v42 = vpop.eup %2668  ;;  %v878_v61 = vmul.f32 %v2667_v13, %v3545_v15  ;;  %2688 = vpow2.f32 %v2239_v32  ;;  %v4555_v13 = vld [vmem:[#allocation11_spill] sm:$0xff] }
 0x13b   :  { %v2671_v8 = vpop.eup %2670  ;;  %2690 = vpow2.f32 %v2241_v58  ;;  %1082 = vmatprep.mubr.f32.mxu0 %v876_v33  ;;  %v879_v15 = vmul.f32 %v2669_v42, %v3566_v4  ;;  %v2246_v58 = vmul.f32 -1.442695, %v3525_v50  ;;  %v2248_v33 = vmul.f32 -1.442695, %v4555_v13 }
 0x13c   :  { %v2673_v48 = vpop.eup %2672  ;;  %2692 = vpow2.f32 %v2242_v62  ;;  %1227 = vmatprep.mubr.f32.mxu1 %v878_v61  ;;  %1083 = vmatmul.mubr.f32.gmra.mrb[48].mxu0 %v875_v47  ;;  %v4556_v47 = vld [vmem:[#allocation12_spill] sm:$0xff] }
 0x13d   :  { %v2675_v27 = vpop.eup %2674  ;;  %v880_v10 = vmul.f32 %v2673_v48, %v3576_v28  ;;  %2694 = vpow2.f32 %v2244_v34  ;;  %1228 = vmatmul.mubr.f32.gmra.mrb[48].mxu1 %v877_v14  ;;  %v2247_v61 = vmul.f32 -1.442695, %v4556_v47  ;;  %v881_v14 = vmul.f32 %v2671_v8, %v3434_v9 }
 0x13e   :  { %v2677_v16 = vpop.eup %2676  ;;  %v690_v38 = vadd.f32 1.0, %v2675_v27  ;;  %2696 = vpow2.f32 %v2243_v19  ;;  %v2251_v8 = vmul.f32 -1.442695, %v3560_v57 }
 0x13f   :  { %v2679_v7 = vpop.eup %2678  ;;  %v691_v31 = vadd.f32 1.0, %v2677_v16  ;;  %2698 = vpow2.f32 %v2245_v20  ;;  %1087 = vmatprep.mubr.f32.mxu0 %v880_v10  ;;  %v4557_v20 = vld [vmem:[#allocation13_spill] sm:$0xff]  ;;  %v2250_v10 = vmul.f32 -1.442695, %v3552_v36 }
 0x140   :  { %v2681_v30 = vpop.eup %2680  ;;  %2700 = vrcp.f32 %v690_v38  ;;  %v693_v24 = vadd.f32 1.0, %v2679_v7  ;;  %1088 = vmatmul.mubr.f32.gmra.mrb[50].mxu0 %v879_v15  ;;  %v2249_v48 = vmul.f32 -1.442695, %v4557_v20 }
 0x141   :  { %v2683_v43 = vpop.eup %2682  ;;  %2702 = vrcp.f32 %v691_v31  ;;  %v692_v5 = vadd.f32 1.0, %v2681_v30 }
 0x142   :  { %v2685_v39 = vpop.eup %2684  ;;  %2704 = vrcp.f32 %v693_v24  ;;  %v694_v28 = vadd.f32 1.0, %v2683_v43  ;;  %v2253_v24 = vmul.f32 -1.442695, %v3569_v12  ;;  %v2254_v43 = vmul.f32 -1.442695, %v3581_v44 }
 0x143   :  { %v2687_v11 = vpop.eup %2686  ;;  %2706 = vrcp.f32 %v692_v5  ;;  %v695_v22 = vadd.f32 1.0, %v2685_v39 }
 0x144   :  { %v2689_v4 = vpop.eup %2688  ;;  %2708 = vrcp.f32 %v694_v28  ;;  %v697_v45 = vadd.f32 1.0, %v2687_v11  ;;  %v2255_v11 = vmul.f32 -1.442695, %v3588_v49 }
 0x145   :  { %v2691_v40 = vpop.eup %2690  ;;  %2710 = vrcp.f32 %v695_v22  ;;  %v696_v0 = vadd.f32 1.0, %v2689_v4 }
 0x146   :  { %v2693_v63 = vpop.eup %2692  ;;  %2712 = vrcp.f32 %v697_v45  ;;  %v698_v29 = vadd.f32 1.0, %v2691_v40  ;;  %v2257_v45 = vmul.f32 -1.442695, %v3592_v17 }
 0x147   :  { %v2695_v60 = vpop.eup %2694  ;;  %2714 = vrcp.f32 %v696_v0  ;;  %v699_v3 = vadd.f32 1.0, %v2693_v63 }
 0x148   :  { %v2697_v26 = vpop.eup %2696  ;;  %2716 = vrcp.f32 %v698_v29  ;;  %v701_v32 = vadd.f32 1.0, %v2695_v60 }
 0x149   :  { %v2699_v23 = vpop.eup %2698  ;;  %2718 = vrcp.f32 %v699_v3  ;;  %v700_v51 = vadd.f32 1.0, %v2697_v26 }
 0x14a   :  { %v2701_v21 = vpop.eup %2700  ;;  %2720 = vrcp.f32 %v701_v32  ;;  %v702_v62 = vadd.f32 1.0, %v2699_v23 }
 0x14b   :  { %v2703_v34 = vpop.eup %2702  ;;  %v882_v42 = vmul.f32 %v2701_v21, %v3439_v55  ;;  %2722 = vrcp.f32 %v700_v51  ;;  %v2252_v55 = vmul.f32 -1.442695, %v3557_v25 }
 0x14c   :  { %v2705_v19 = vpop.eup %2704  ;;  %2724 = vrcp.f32 %v702_v62  ;;  %v883_v7 = vmul.f32 %v2703_v34, %v3451_v35 }
 0x14d   :  { %v2707_v27 = vpop.eup %2706  ;;  %2726 = vpow2.f32 %v2246_v58  ;;  %1232 = vmatprep.mubr.f32.mxu1 %v882_v42  ;;  %v885_v30 = vmul.f32 %v2705_v19, %v3454_v52 }
 0x14e   :  { %v2709_v16 = vpop.eup %2708  ;;  %v884_v15 = vmul.f32 %v2707_v27, %v3457_v59  ;;  %2728 = vpow2.f32 %v2248_v33  ;;  %1233 = vmatmul.mubr.f32.gmra.mrb[50].mxu1 %v881_v14 }
 0x14f   :  { %v2711_v38 = vpop.eup %2710  ;;  %v886_v9 = vmul.f32 %v2709_v16, %v3463_v37  ;;  %2730 = vpow2.f32 %v2247_v61  ;;  %v2256_v37 = vmul.f32 -1.442695, %v3585_v53 }
 0x150   :  { %v2713_v31 = vpop.eup %2712  ;;  %2732 = vpow2.f32 %v2249_v48  ;;  %1092 = vmatprep.mubr.f32.mxu0 %v884_v15  ;;  %v887_v52 = vmul.f32 %v2711_v38, %v3477_v54 }
 0x151   :  { %v2715_v59 = vpop.eup %2714  ;;  %2734 = vpow2.f32 %v2250_v10  ;;  %1237 = vmatprep.mubr.f32.mxu1 %v886_v9  ;;  %1093 = vmatmul.mubr.f32.gmra.mrb[52].mxu0 %v883_v7  ;;  %v889_v4 = vmul.f32 %v2713_v31, %v3480_v2 }
 0x152   :  { %v2717_v5 = vpop.eup %2716  ;;  %v888_v35 = vmul.f32 %v2715_v59, %v3483_v1  ;;  %2736 = vpow2.f32 %v2252_v55  ;;  %1238 = vmatmul.mubr.f32.gmra.mrb[52].mxu1 %v885_v30 }
 0x153   :  { %v2719_v39 = vpop.eup %2718  ;;  %v890_v28 = vmul.f32 %v2717_v5, %v3490_v6  ;;  %2738 = vpow2.f32 %v2251_v8 }
 0x154   :  { %v2721_v22 = vpop.eup %2720  ;;  %2740 = vpow2.f32 %v2253_v24  ;;  %1097 = vmatprep.mubr.f32.mxu0 %v888_v35  ;;  %v891_v6 = vmul.f32 %v2719_v39, %v3503_v56 }
 0x155   :  { %v2723_v1 = vpop.eup %2722  ;;  %2742 = vpow2.f32 %v2254_v43  ;;  %1242 = vmatprep.mubr.f32.mxu1 %v890_v28  ;;  %1098 = vmatmul.mubr.f32.gmra.mrb[54].mxu0 %v887_v52  ;;  %v893_v29 = vmul.f32 %v2721_v22, %v3506_v46  ;;  %v4559_v22 = vld [vmem:[#allocation8_spill] sm:$0xff] }
 0x156   :  { %v2725_v40 = vpop.eup %2724  ;;  %v892_v0 = vmul.f32 %v2723_v1, %v4553_v18  ;;  %2744 = vpow2.f32 %v2256_v37  ;;  %1243 = vmatmul.mubr.f32.gmra.mrb[54].mxu1 %v889_v4  ;;  %v4560_v4 = vld [vmem:[#allocation6_spill] sm:$0xff] }
 0x157   :  { %v2727_v54 = vpop.eup %2726  ;;  %v894_v63 = vmul.f32 %v2725_v40, %v4554_v41  ;;  %2746 = vpow2.f32 %v2255_v11  ;;  %v4562_v1 = vsub.s32 3, %v4560_v4 }
 0x158   :  { %v2729_v2 = vpop.eup %2728  ;;  %v703_v60 = vadd.f32 1.0, %v2727_v54  ;;  %2748 = vpow2.f32 %v2257_v45  ;;  %1102 = vmatprep.mubr.f32.mxu0 %v892_v0 }
 0x159   :  { %v2731_v3 = vpop.eup %2730  ;;  %v705_v26 = vadd.f32 1.0, %v2729_v2  ;;  %1247 = vmatprep.mubr.f32.mxu1 %v894_v63  ;;  %1103 = vmatmul.mubr.f32.gmra.mrb[56].mxu0 %v891_v6  ;;  %v1437_v6 = vld [vmem:[%s4522_s1 + $0x10] sm:$0xff]  ;;  %v1617_v63 = vsub.s32 4, %v4560_v4 }
 0x15a   :  { %v2733_v32 = vpop.eup %2732  ;;  %2750 = vrcp.f32 %v703_v60  ;;  %v704_v18 = vadd.f32 1.0, %v2731_v3  ;;  %1248 = vmatmul.mubr.f32.gmra.mrb[56].mxu1 %v893_v29  ;;  %v1438_v60 = vld [vmem:[%s4522_s1 + $0x18] sm:$0xff]  ;;  %v1445_v3 = vld [vmem:[%s4522_s1 + $0x50] sm:$0xff] }
 0x15b   :  { %v2735_v23 = vpop.eup %2734  ;;  %2752 = vrcp.f32 %v705_v26  ;;  %v706_v56 = vadd.f32 1.0, %v2733_v32  ;;  %v1446_v26 = vld [vmem:[%s4522_s1 + $0x58] sm:$0xff] }
 0x15c   :  { %v2737_v51 = vpop.eup %2736  ;;  %2754 = vrcp.f32 %v704_v18  ;;  %v707_v41 = vadd.f32 1.0, %v2735_v23  ;;  %v1621_v18 = vsub.s32 5, %v4560_v4 }
 0x15d   :  { %v2739_v58 = vpop.eup %2738  ;;  %2756 = vrcp.f32 %v706_v56  ;;  %v709_v46 = vadd.f32 1.0, %v2737_v51  ;;  %v1439_v51 = vld [vmem:[%s4522_s1 + $0x20] sm:$0xff] }
 0x15e   :  { %v2741_v21 = vpop.eup %2740  ;;  %2758 = vrcp.f32 %v707_v41  ;;  %v708_v62 = vadd.f32 1.0, %v2739_v58  ;;  %v1447_v41 = vld [vmem:[%s4522_s1 + $0x60] sm:$0xff] }
 0x15f   :  { %v2743_v33 = vpop.eup %2742  ;;  %2760 = vrcp.f32 %v709_v46  ;;  %v710_v34 = vadd.f32 1.0, %v2741_v21 }
 0x160   :  { %v2745_v42 = vpop.eup %2744  ;;  %2762 = vrcp.f32 %v708_v62  ;;  %v711_v61 = vadd.f32 1.0, %v2743_v33  ;;  %v1625_v62 = vsub.s32 6, %v4560_v4 }
 0x161   :  { %v2747_v19 = vpop.eup %2746  ;;  %2764 = vrcp.f32 %v710_v34  ;;  %v713_v14 = vadd.f32 1.0, %v2745_v42  ;;  %v1440_v42 = vld [vmem:[%s4522_s1 + $0x28] sm:$0xff] }
 0x162   :  { %v2749_v48 = vpop.eup %2748  ;;  %2766 = vrcp.f32 %v711_v61  ;;  %v712_v27 = vadd.f32 1.0, %v2747_v19  ;;  %v1448_v61 = vld [vmem:[%s4522_s1 + $0x68] sm:$0xff] }
 0x163   :  { %2768 = vrcp.f32 %v713_v14  ;;  %v714_v10 = vadd.f32 1.0, %v2749_v48  ;;  %v1455_v48 = vld [vmem:[%s4522_s1 + $0xa0] sm:$0xff] }
 0x164   :  { %v2751_v16 = vpop.eup %2750  ;;  %2770 = vrcp.f32 %v712_v27 }
 0x165   :  { %v2753_v15 = vpop.eup %2752  ;;  %2772 = vrcp.f32 %v714_v10  ;;  %v895_v8 = vmul.f32 %v2751_v16, %v3525_v50  ;;  %v1629_v10 = vsub.s32 7, %v4560_v4 }
 0x166   :  { %v2755_v55 = vpop.eup %2754  ;;  %v897_v24 = vmul.f32 %v2753_v15, %v4555_v13 }
 0x167   :  { %v2757_v38 = vpop.eup %2756  ;;  %v896_v7 = vmul.f32 %v2755_v55, %v4556_v47  ;;  %v1456_v55 = vld [vmem:[%s4522_s1 + $0xa8] sm:$0xff] }
 0x168   :  { %v2759_v9 = vpop.eup %2758  ;;  %v898_v31 = vmul.f32 %v2757_v38, %v4557_v20  ;;  %v1441_v38 = vld [vmem:[%s4522_s1 + $0x30] sm:$0xff] }
 0x169   :  { %v2761_v30 = vpop.eup %2760  ;;  %1107 = vmatprep.mubr.f32.mxu0 %v896_v7  ;;  %v899_v37 = vmul.f32 %v2759_v9, %v3552_v36  ;;  %v1595_v36 = vld [vmem:[%s4528_s7] sm:$0xff]  ;;  %v1449_v7 = vld [vmem:[%s4522_s1 + $0x70] sm:$0xff] }
 0x16a   :  { %v2763_v59 = vpop.eup %2762  ;;  %1252 = vmatprep.mubr.f32.mxu1 %v898_v31  ;;  %1108 = vmatmul.mubr.f32.gmra.mrb[58].mxu0 %v895_v8  ;;  %v901_v50 = vmul.f32 %v2761_v30, %v3557_v25  ;;  %v4558_v25 = vld [vmem:[#allocation7_spill] sm:$0xff]  ;;  %v3686_v40 = vrot.slane %v1595_v36, %v4562_v1  ;;  %v3704_v32 = vrot.slane %v1595_v36, %v1617_v63 }
 0x16b   :  { %v2765_v43 = vpop.eup %2764  ;;  %v900_v5 = vmul.f32 %v2763_v59, %v3560_v57  ;;  %1253 = vmatmul.mubr.f32.gmra.mrb[58].mxu1 %v897_v24  ;;  %v3716_v21 = vrot.slane %v1595_v36, %v1621_v18  ;;  %v3730_v27 = vrot.slane %v1595_v36, %v1625_v62  ;;  %v1457_v31 = vld [vmem:[%s4522_s1 + $0xb0] sm:$0xff]  ;;  %v3749_v59 = vrot.slane %v1595_v36, %v1629_v10  ;;  %v1444_v18 = vld [vmem:[%s4522_s1 + $0x48] sm:$0xff] }
 0x16c   :  { %v2767_v35 = vpop.eup %2766  ;;  %v902_v47 = vmul.f32 %v2765_v43, %v3569_v12  ;;  %v3669_v12 = vrot.slane %v1595_v36, %v4558_v25  ;;  %v1652_v23 = vmul.f32 %v3686_v40, %v1438_v60  ;;  %v1653_v33 = vmul.f32 %v3704_v32, %v1439_v51 }
 0x16d   :  { %v2769_v39 = vpop.eup %2768  ;;  %1112 = vmatprep.mubr.f32.mxu0 %v900_v5  ;;  %v903_v28 = vmul.f32 %v2767_v35, %v3581_v44  ;;  %v4561_v44 = vsub.s32 2, %v4560_v4  ;;  %v1654_v16 = vmul.f32 %v3716_v21, %v1440_v42  ;;  %v1662_v9 = vmul.f32 %v3686_v40, %v1448_v61  ;;  %v1468_v42 = vld [vmem:[%s4522_s1 + $0x108] sm:$0xff]  ;;  %v1475_v61 = vld [vmem:[%s4522_s1 + $0x140] sm:$0xff] }
 0x16e   :  { %v2771_v20 = vpop.eup %2770  ;;  %1257 = vmatprep.mubr.f32.mxu1 %v902_v47  ;;  %1113 = vmatmul.mubr.f32.gmra.mrb[60].mxu0 %v899_v37  ;;  %v905_v11 = vmul.f32 %v2769_v39, %v3585_v53  ;;  %v1435_v53 = vld [vmem:[%s4522_s1] sm:$0xff]  ;;  %v1659_v58 = vmul.f32 %v3669_v12, %v1445_v3  ;;  %v1669_v30 = vmul.f32 %v3669_v12, %v1455_v48  ;;  %v1442_v37 = vld [vmem:[%s4522_s1 + $0x38] sm:$0xff]  ;;  %v1596_v47 = vld [vmem:[%s4528_s7 + $0x8] sm:$0x3] }
 0x16f   :  { %v2773_v13 = vpop.eup %2772  ;;  %v904_v52 = vmul.f32 %v2771_v20, %v3588_v49  ;;  %1258 = vmatmul.mubr.f32.gmra.mrb[60].mxu1 %v901_v50  ;;  %v3672_v49 = vrot.slane %v1595_v36, %v4559_v22  ;;  %v3676_v45 = vrot.slane %v1595_v36, %v4561_v44  ;;  %v1649_v0 = vmul.f32 %v3669_v12, %v1435_v53  ;;  %v1450_v39 = vld [vmem:[%s4522_s1 + $0x78] sm:$0xff]  ;;  %v1465_v44 = vld [vmem:[%s4522_s1 + $0xf0] sm:$0xff] }
 0x170   :  { %v906_v57 = vmul.f32 %v2773_v13, %v3592_v17  ;;  %v1436_v17 = vld [vmem:[%s4522_s1 + $0x8] sm:$0xff]  ;;  %v1655_v43 = vmul.f32 %v3730_v27, %v1441_v38  ;;  %v1663_v35 = vmul.f32 %v3704_v32, %v1449_v7  ;;  %v1458_v36 = vld [vmem:[%s4522_s1 + $0xb8] sm:$0xff]  ;;  %v1679_v63 = vmul.f32 %v3669_v12, %v1465_v44  ;;  %v1461_v48 = vld [vmem:[%s4522_s1 + $0xd0] sm:$0xff] }
 0x171   :  { %1117 = vmatprep.mubr.f32.mxu0 %v904_v52  ;;  %v1650_v54 = vmul.f32 %v3672_v49, %v1436_v17  ;;  %v1651_v2 = vmul.f32 %v3676_v45, %v1437_v6  ;;  %v1660_v46 = vmul.f32 %v3672_v49, %v1446_v26  ;;  %v1661_v19 = vmul.f32 %v3676_v45, %v1447_v41  ;;  %v1466_v53 = vld [vmem:[%s4522_s1 + $0xf8] sm:$0xff]  ;;  %v1451_v17 = vld [vmem:[%s4522_s1 + $0x80] sm:$0xff] }
 0x172   :  { %1262 = vmatprep.mubr.f32.mxu1 %v906_v57  ;;  %1118 = vmatmul.mubr.f32.gmra.mrb[62].mxu0 %v903_v28  ;;  %v1670_v24 = vmul.f32 %v3672_v49, %v1456_v55  ;;  %v1671_v20 = vmul.f32 %v3676_v45, %v1457_v31  ;;  %v3764_v52 = vrot.slane %v1596_v47, %v4558_v25  ;;  %v1443_v25 = vld [vmem:[%s4522_s1 + $0x40] sm:$0xff]  ;;  %v1476_v31 = vld [vmem:[%s4522_s1 + $0x148] sm:$0xff] }
 0x173   :  { %1263 = vmatmul.mubr.f32.gmra.mrb[62].mxu1 %v905_v11  ;;  %v1809_v29 = vadd.f32 %v1650_v54, %v1649_v0  ;;  %v1820_v14 = vadd.f32 %v1660_v46, %v1659_v58  ;;  %v1656_v28 = vmul.f32 %v3749_v59, %v1442_v37  ;;  %v1664_v11 = vmul.f32 %v3716_v21, %v1450_v39  ;;  %v1459_v0 = vld [vmem:[%s4522_s1 + $0xc0] sm:$0xff]  ;;  %v1470_v37 = vld [vmem:[%s4522_s1 + $0x118] sm:$0xff] }
 0x174   :  { %v1831_v13 = vadd.f32 %v1670_v24, %v1669_v30  ;;  %v1672_v54 = vmul.f32 %v3686_v40, %v1458_v36  ;;  %v1665_v3 = vmul.f32 %v3730_v27, %v1451_v17  ;;  %v1467_v26 = vld [vmem:[%s4522_s1 + $0x100] sm:$0xff]  ;;  %v1673_v51 = vmul.f32 %v3704_v32, %v1459_v0  ;;  %v1477_v30 = vld [vmem:[%s4522_s1 + $0x150] sm:$0xff]  ;;  %v1454_v24 = vld [vmem:[%s4522_s1 + $0x98] sm:$0xff] }
 0x175   :  { %v1810_v56 = vadd.f32 %v1809_v29, %v1651_v2  ;;  %v1821_v8 = vadd.f32 %v1820_v14, %v1661_v19  ;;  %v3789_v2 = vrot.slane %v1596_v47, %v4559_v22  ;;  %v1657_v29 = vmul.f32 %v3764_v52, %v1443_v25  ;;  %v1460_v22 = vld [vmem:[%s4522_s1 + $0xc8] sm:$0xff]  ;;  %v1453_v19 = vld [vmem:[%s4522_s1 + $0x90] sm:$0xff]  ;;  %v1471_v44 = vld [vmem:[%s4522_s1 + $0x120] sm:$0xff] }
 0x176   :  { %v1832_v6 = vadd.f32 %v1831_v13, %v1671_v20  ;;  %v1680_v58 = vmul.f32 %v3672_v49, %v1466_v53  ;;  %v1667_v38 = vmul.f32 %v3764_v52, %v1453_v19  ;;  %v1675_v7 = vmul.f32 %v3730_v27, %v1461_v48  ;;  %v1479_v53 = vld [vmem:[%s4522_s1 + $0x160] sm:$0xff] }
 0x177   :  { %v1811_v34 = vadd.f32 %v1810_v56, %v1652_v23  ;;  %v1822_v50 = vadd.f32 %v1821_v8, %v1662_v9  ;;  %v1452_v23 = vld [vmem:[%s4522_s1 + $0x88] sm:$0xff]  ;;  %v1658_v46 = vmul.f32 %v3789_v2, %v1444_v18  ;;  %v1469_v9 = vld [vmem:[%s4522_s1 + $0x110] sm:$0xff]  ;;  %v1689_v47 = vmul.f32 %v3669_v12, %v1475_v61 }
 0x178   :  { %v1833_v41 = vadd.f32 %v1832_v6, %v1672_v54  ;;  %v1842_v8 = vadd.f32 %v1680_v58, %v1679_v63  ;;  %v1668_v39 = vmul.f32 %v3789_v2, %v1454_v24  ;;  %v1683_v20 = vmul.f32 %v3704_v32, %v1469_v9  ;;  %v1485_v6 = vld [vmem:[%s4522_s1 + $0x190] sm:$0xff]  ;;  %v1486_v63 = vld [vmem:[%s4522_s1 + $0x198] sm:$0xff]  ;;  %v1488_v61 = vld [vmem:[%s4522_s1 + $0x1a8] sm:$0xff] }
 0x179   :  { %v1812_v15 = vadd.f32 %v1811_v34, %v1653_v33  ;;  %v1823_v1 = vadd.f32 %v1822_v50, %v1663_v35  ;;  %v1666_v33 = vmul.f32 %v3749_v59, %v1452_v23  ;;  %v1674_v34 = vmul.f32 %v3716_v21, %v1460_v22 }
 0x17a   :  { %v1834_v10 = vadd.f32 %v1833_v41, %v1673_v51  ;;  %v1690_v25 = vmul.f32 %v3672_v49, %v1476_v31  ;;  %v1691_v17 = vmul.f32 %v3676_v45, %v1477_v30  ;;  %v1684_v0 = vmul.f32 %v3716_v21, %v1470_v37  ;;  %v1480_v41 = vld [vmem:[%s4522_s1 + $0x168] sm:$0xff]  ;;  %v1497_v37 = vld [vmem:[%s4522_s1 + $0x1f0] sm:$0xff] }
 0x17b   :  { %v1813_v5 = vadd.f32 %v1812_v15, %v1654_v16  ;;  %v1824_v56 = vadd.f32 %v1823_v1, %v1664_v11  ;;  %v1681_v16 = vmul.f32 %v3676_v45, %v1467_v26  ;;  %v1682_v15 = vmul.f32 %v3686_v40, %v1468_v42  ;;  %v1463_v11 = vld [vmem:[%s4522_s1 + $0xe0] sm:$0xff]  ;;  %v1472_v26 = vld [vmem:[%s4522_s1 + $0x128] sm:$0xff] }
 0x17c   :  { %v1835_v35 = vadd.f32 %v1834_v10, %v1674_v34  ;;  %v1677_v1 = vmul.f32 %v3764_v52, %v1463_v11  ;;  %v1853_v23 = vadd.f32 %v1690_v25, %v1689_v47  ;;  %v1685_v22 = vmul.f32 %v3730_v27, %v1471_v44  ;;  %v1481_v34 = vld [vmem:[%s4522_s1 + $0x170] sm:$0xff]  ;;  %v1483_v47 = vld [vmem:[%s4522_s1 + $0x180] sm:$0xff] }
 0x17d   :  { %v1814_v57 = vadd.f32 %v1813_v5, %v1655_v43  ;;  %v1825_v14 = vadd.f32 %v1824_v56, %v1665_v3  ;;  %v1462_v5 = vld [vmem:[%s4522_s1 + $0xd8] sm:$0xff]  ;;  %v1843_v13 = vadd.f32 %v1842_v8, %v1681_v16  ;;  %v1693_v58 = vmul.f32 %v3704_v32, %v1479_v53  ;;  %v1495_v16 = vld [vmem:[%s4522_s1 + $0x1e0] sm:$0xff]  ;;  %v1489_v8 = vld [vmem:[%s4522_s1 + $0x1b0] sm:$0xff] }
 0x17e   :  { %v1676_v50 = vmul.f32 %v3749_v59, %v1462_v5  ;;  %v1836_v36 = vadd.f32 %v1835_v35, %v1675_v7  ;;  %v1854_v42 = vadd.f32 %v1853_v23, %v1691_v17  ;;  %v1699_v19 = vmul.f32 %v3669_v12, %v1485_v6  ;;  %v1498_v53 = vld [vmem:[%s4522_s1 + $0x1f8] sm:$0xff]  ;;  %v1505_v6 = vld [vmem:[%s4522_s1 + $0x230] sm:$0xff] }
 0x17f   :  { %v1815_v60 = vadd.f32 %v1814_v57, %v1656_v28  ;;  %v1826_v43 = vadd.f32 %v1825_v14, %v1666_v33  ;;  %v1478_v28 = vld [vmem:[%s4522_s1 + $0x158] sm:$0xff]  ;;  %v1844_v54 = vadd.f32 %v1843_v13, %v1682_v15  ;;  %v1473_v33 = vld [vmem:[%s4522_s1 + $0x130] sm:$0xff]  ;;  %v1700_v14 = vmul.f32 %v3672_v49, %v1486_v63  ;;  %v1496_v15 = vld [vmem:[%s4522_s1 + $0x1e8] sm:$0xff] }
 0x180   :  { %v1837_v3 = vadd.f32 %v1836_v36, %v1676_v50  ;;  %v1692_v18 = vmul.f32 %v3686_v40, %v1478_v28  ;;  %v1686_v48 = vmul.f32 %v3749_v59, %v1472_v26  ;;  %v1694_v7 = vmul.f32 %v3716_v21, %v1480_v41  ;;  %v1490_v50 = vld [vmem:[%s4522_s1 + $0x1b8] sm:$0xff] }
 0x181   :  { %v1816_v62 = vadd.f32 %v1815_v60, %v1657_v29  ;;  %v1827_v57 = vadd.f32 %v1826_v43, %v1667_v38  ;;  %v1464_v60 = vld [vmem:[%s4522_s1 + $0xe8] sm:$0xff]  ;;  %v1845_v51 = vadd.f32 %v1844_v54, %v1683_v20  ;;  %v1474_v38 = vld [vmem:[%s4522_s1 + $0x138] sm:$0xff]  ;;  %v1687_v30 = vmul.f32 %v3764_v52, %v1473_v33  ;;  %v1491_v20 = vld [vmem:[%s4522_s1 + $0x1c0] sm:$0xff] }
 0x182   :  { %v1678_v56 = vmul.f32 %v3789_v2, %v1464_v60  ;;  %v1855_v9 = vadd.f32 %v1854_v42, %v1692_v18  ;;  %v1482_v43 = vld [vmem:[%s4522_s1 + $0x178] sm:$0xff]  ;;  %v1695_v5 = vmul.f32 %v3730_v27, %v1481_v34  ;;  %v1702_v35 = vmul.f32 %v3686_v40, %v1488_v61  ;;  %v1484_v60 = vld [vmem:[%s4522_s1 + $0x188] sm:$0xff]  ;;  %v1493_v33 = vld [vmem:[%s4522_s1 + $0x1d0] sm:$0xff] }
 0x183   :  { %v1817_v55 = vadd.f32 %v1816_v62, %v1658_v46  ;;  %v1828_v29 = vadd.f32 %v1827_v57, %v1668_v39  ;;  %v1487_v46 = vld [vmem:[%s4522_s1 + $0x1a0] sm:$0xff]  ;;  %v1838_v62 = vadd.f32 %v1837_v3, %v1677_v1  ;;  %v1846_v10 = vadd.f32 %v1845_v51, %v1684_v0  ;;  %v1506_v63 = vld [vmem:[%s4522_s1 + $0x238] sm:$0xff]  ;;  %v1500_v51 = vld [vmem:[%s4522_s1 + $0x208] sm:$0xff] }
 0x184   :  { %v1701_v31 = vmul.f32 %v3676_v45, %v1487_v46  ;;  %v1856_v39 = vadd.f32 %v1855_v9, %v1693_v58  ;;  %v1864_v13 = vadd.f32 %v1700_v14, %v1699_v19  ;;  %v1709_v28 = vmul.f32 %v3669_v12, %v1495_v16  ;;  %v1499_v0 = vld [vmem:[%s4522_s1 + $0x200] sm:$0xff] }
 0x185   :  { %1818 = vadd.xlane.f32.xlu1 %v1817_v55  ;;  %v1839_v55 = vadd.f32 %v1838_v62, %v1678_v56  ;;  %v1847_v24 = vadd.f32 %v1846_v10, %v1685_v22  ;;  %v1710_v57 = vmul.f32 %v3672_v49, %v1496_v15  ;;  %v1688_v11 = vmul.f32 %v3789_v2, %v1474_v38  ;;  %v1492_v56 = vld [vmem:[%s4522_s1 + $0x1c8] sm:$0xff]  ;;  %v1507_v46 = vld [vmem:[%s4522_s1 + $0x240] sm:$0xff]  ;;  %v1501_v10 = vld [vmem:[%s4522_s1 + $0x210] sm:$0xff] }
 0x186   :  { %v1703_v44 = vmul.f32 %v3704_v32, %v1489_v8  ;;  %v1696_v25 = vmul.f32 %v3749_v59, %v1482_v43  ;;  %v1857_v17 = vadd.f32 %v1856_v39, %v1694_v7  ;;  %v1865_v1 = vadd.f32 %v1864_v13, %v1701_v31  ;;  %v1508_v15 = vld [vmem:[%s4522_s1 + $0x248] sm:$0xff] }
 0x187   :  { %v1848_v36 = vadd.f32 %v1847_v24, %v1686_v48  ;;  %v1711_v54 = vmul.f32 %v3676_v45, %v1497_v37  ;;  %v1697_v3 = vmul.f32 %v3764_v52, %v1483_v47  ;;  %v1704_v26 = vmul.f32 %v3716_v21, %v1490_v50  ;;  %v1516_v8 = vld [vmem:[%s4522_s1 + $0x288] sm:$0xff]  ;;  %v1502_v37 = vld [vmem:[%s4522_s1 + $0x218] sm:$0xff] }
 0x188   :  { %v1705_v18 = vmul.f32 %v3730_v27, %v1491_v20  ;;  %v1858_v23 = vadd.f32 %v1857_v17, %v1695_v5  ;;  %v1866_v22 = vadd.f32 %v1865_v1, %v1702_v35  ;;  %v1712_v41 = vmul.f32 %v3686_v40, %v1498_v53  ;;  %v1509_v35 = vld [vmem:[%s4522_s1 + $0x250] sm:$0xff]  ;;  %v1511_v53 = vld [vmem:[%s4522_s1 + $0x260] sm:$0xff] }
 0x189   :  { %1829 = vadd.xlane.f32.xlu1 %v1828_v29  ;;  %v1849_v29 = vadd.f32 %v1848_v36, %v1687_v30  ;;  %v1875_v58 = vadd.f32 %v1710_v57, %v1709_v28  ;;  %v1713_v34 = vmul.f32 %v3704_v32, %v1499_v0  ;;  %v1719_v42 = vmul.f32 %v3669_v12, %v1505_v6  ;;  %v1494_v30 = vld [vmem:[%s4522_s1 + $0x1d8] sm:$0xff]  ;;  %v1517_v20 = vld [vmem:[%s4522_s1 + $0x290] sm:$0xff] }
 0x18a   :  { %v1720_v61 = vmul.f32 %v3672_v49, %v1506_v63  ;;  %v1698_v19 = vmul.f32 %v3789_v2, %v1484_v60  ;;  %v1859_v14 = vadd.f32 %v1858_v23, %v1696_v25  ;;  %v1867_v48 = vadd.f32 %v1866_v22, %v1703_v44  ;;  %v1510_v44 = vld [vmem:[%s4522_s1 + $0x258] sm:$0xff]  ;;  %v1504_v63 = vld [vmem:[%s4522_s1 + $0x228] sm:$0xff] }
 0x18b   :  { %v1850_v62 = vadd.f32 %v1849_v29, %v1688_v11  ;;  %v1876_v16 = vadd.f32 %v1875_v58, %v1711_v54  ;;  %v1706_v38 = vmul.f32 %v3749_v59, %v1492_v56  ;;  %v1714_v7 = vmul.f32 %v3716_v21, %v1500_v51  ;;  %v1503_v11 = vld [vmem:[%s4522_s1 + $0x220] sm:$0xff]  ;;  %v1518_v54 = vld [vmem:[%s4522_s1 + $0x298] sm:$0xff] }
 0x18c   :  { %v1721_v9 = vmul.f32 %v3676_v45, %v1507_v46  ;;  %v1860_v31 = vadd.f32 %v1859_v14, %v1697_v3  ;;  %v1707_v24 = vmul.f32 %v3764_v52, %v1493_v33  ;;  %v1868_v43 = vadd.f32 %v1867_v48, %v1704_v26  ;;  %v1525_v26 = vld [vmem:[%s4522_s1 + $0x2d0] sm:$0xff]  ;;  %v1520_v48 = vld [vmem:[%s4522_s1 + $0x2a8] sm:$0xff] }
 0x18d   :  { %1840 = vadd.xlane.f32.xlu1 %v1839_v55  ;;  %v1515_v55 = vld [vmem:[%s4522_s1 + $0x280] sm:$0xff]  ;;  %v1877_v5 = vadd.f32 %v1876_v16, %v1712_v41  ;;  %v1715_v47 = vmul.f32 %v3730_v27, %v1501_v10  ;;  %v1722_v39 = vmul.f32 %v3686_v40, %v1508_v15  ;;  %v1886_v50 = vadd.f32 %v1720_v61, %v1719_v42  ;;  %v1513_v33 = vld [vmem:[%s4522_s1 + $0x270] sm:$0xff] }
 0x18e   :  { %v1729_v13 = vmul.f32 %v3669_v12, %v1515_v55  ;;  %v1861_v28 = vadd.f32 %v1860_v31, %v1698_v19  ;;  %v1869_v57 = vadd.f32 %v1868_v43, %v1705_v18  ;;  %v1730_v25 = vmul.f32 %v3672_v49, %v1516_v8  ;;  %v1526_v18 = vld [vmem:[%s4522_s1 + $0x2d8] sm:$0xff]  ;;  %v1519_v41 = vld [vmem:[%s4522_s1 + $0x2a0] sm:$0xff]  ;;  %v1521_v10 = vld [vmem:[%s4522_s1 + $0x2b0] sm:$0xff] }
 0x18f   :  { %v1878_v36 = vadd.f32 %v1877_v5, %v1713_v34  ;;  %v1708_v17 = vmul.f32 %v3789_v2, %v1494_v30  ;;  %v1723_v1 = vmul.f32 %v3704_v32, %v1509_v35  ;;  %v1887_v0 = vadd.f32 %v1886_v50, %v1721_v9  ;;  %v1527_v61 = vld [vmem:[%s4522_s1 + $0x2e0] sm:$0xff]  ;;  %v1528_v31 = vld [vmem:[%s4522_s1 + $0x2e8] sm:$0xff] }
 0x190   :  { %v1870_v6 = vadd.f32 %v1869_v57, %v1706_v38  ;;  %v1716_v29 = vmul.f32 %v3749_v59, %v1502_v37  ;;  %v1731_v3 = vmul.f32 %v3676_v45, %v1517_v20  ;;  %v1717_v23 = vmul.f32 %v3764_v52, %v1503_v11  ;;  %v1535_v35 = vld [vmem:[%s4522_s1 + $0x320] sm:$0xff]  ;;  %v1536_v37 = vld [vmem:[%s4522_s1 + $0x328] sm:$0xff] }
 0x191   :  { %1851 = vadd.xlane.f32.xlu1 %v1850_v62  ;;  %v1879_v60 = vadd.f32 %v1878_v36, %v1714_v7  ;;  %v1724_v56 = vmul.f32 %v3716_v21, %v1510_v44  ;;  %v1725_v22 = vmul.f32 %v3730_v27, %v1511_v53  ;;  %v1888_v51 = vadd.f32 %v1887_v0, %v1722_v39  ;;  %v1512_v62 = vld [vmem:[%s4522_s1 + $0x268] sm:$0xff]  ;;  %v1514_v7 = vld [vmem:[%s4522_s1 + $0x278] sm:$0xff]  ;;  %v1523_v36 = vld [vmem:[%s4522_s1 + $0x2c0] sm:$0xff] }
 0x192   :  { %v1871_v58 = vadd.f32 %v1870_v6, %v1707_v24  ;;  %v1732_v34 = vmul.f32 %v3686_v40, %v1518_v54  ;;  %v1897_v42 = vadd.f32 %v1730_v25, %v1729_v13  ;;  %v1718_v19 = vmul.f32 %v3789_v2, %v1504_v63  ;;  %v1522_v39 = vld [vmem:[%s4522_s1 + $0x2b8] sm:$0xff]  ;;  %v1524_v0 = vld [vmem:[%s4522_s1 + $0x2c8] sm:$0xff]  ;;  %v1531_v6 = vld [vmem:[%s4522_s1 + $0x300] sm:$0xff] }
 0x193   :  { %v1880_v46 = vadd.f32 %v1879_v60, %v1715_v47  ;;  %v1889_v14 = vadd.f32 %v1888_v51, %v1723_v1  ;;  %v1739_v16 = vmul.f32 %v3669_v12, %v1525_v26  ;;  %v1740_v15 = vmul.f32 %v3672_v49, %v1526_v18  ;;  %v1530_v44 = vld [vmem:[%s4522_s1 + $0x2f8] sm:$0xff]  ;;  %v1532_v26 = vld [vmem:[%s4522_s1 + $0x308] sm:$0xff] }
 0x194   :  { %v1872_v55 = vadd.f32 %v1871_v58, %v1708_v17  ;;  %v1733_v9 = vmul.f32 %v3704_v32, %v1519_v41  ;;  %v1898_v8 = vadd.f32 %v1897_v42, %v1731_v3  ;;  %v1726_v30 = vmul.f32 %v3749_v59, %v1512_v62  ;;  %v1537_v17 = vld [vmem:[%s4522_s1 + $0x330] sm:$0xff]  ;;  %v1546_v62 = vld [vmem:[%s4522_s1 + $0x378] sm:$0xff] }
 0x195   :  { %1862 = vadd.xlane.f32.xlu1 %v1861_v28  ;;  %v1881_v38 = vadd.f32 %v1880_v46, %v1716_v29  ;;  %v1727_v24 = vmul.f32 %v3764_v52, %v1513_v33  ;;  %v1890_v43 = vadd.f32 %v1889_v14, %v1724_v56  ;;  %v1741_v5 = vmul.f32 %v3676_v45, %v1527_v61  ;;  %v1529_v28 = vld [vmem:[%s4522_s1 + $0x2f0] sm:$0xff]  ;;  %v1538_v56 = vld [vmem:[%s4522_s1 + $0x338] sm:$0xff]  ;;  %v1539_v14 = vld [vmem:[%s4522_s1 + $0x340] sm:$0xff] }
 0x196   :  { %v1734_v50 = vmul.f32 %v3716_v21, %v1520_v48  ;;  %v1735_v20 = vmul.f32 %v3730_v27, %v1521_v10  ;;  %v1899_v13 = vadd.f32 %v1898_v8, %v1732_v34  ;;  %v1728_v57 = vmul.f32 %v3789_v2, %v1514_v7  ;;  %v1545_v46 = vld [vmem:[%s4522_s1 + $0x370] sm:$0xff]  ;;  %v1534_v10 = vld [vmem:[%s4522_s1 + $0x318] sm:$0xff]  ;;  %v1547_v7 = vld [vmem:[%s4522_s1 + $0x380] sm:$0xff] }
 0x197   :  { %v1882_v47 = vadd.f32 %v1881_v38, %v1717_v23  ;;  %v1891_v11 = vadd.f32 %v1890_v43, %v1725_v22  ;;  %v1742_v53 = vmul.f32 %v3686_v40, %v1528_v31  ;;  %v1908_v25 = vadd.f32 %v1740_v15, %v1739_v16  ;;  %v1533_v42 = vld [vmem:[%s4522_s1 + $0x310] sm:$0xff]  ;;  %v1540_v15 = vld [vmem:[%s4522_s1 + $0x348] sm:$0xff] }
 0x198   :  { %v1900_v54 = vadd.f32 %v1899_v13, %v1733_v9  ;;  %v1749_v63 = vmul.f32 %v3669_v12, %v1535_v35  ;;  %v1750_v29 = vmul.f32 %v3672_v49, %v1536_v37  ;;  %v1736_v3 = vmul.f32 %v3749_v59, %v1522_v39  ;;  %v1541_v31 = vld [vmem:[%s4522_s1 + $0x350] sm:$0xff]  ;;  %v1543_v37 = vld [vmem:[%s4522_s1 + $0x360] sm:$0xff] }
 0x199   :  { %1873 = vadd.xlane.f32.xlu1 %v1872_v55  ;;  %v1883_v1 = vadd.f32 %v1882_v47, %v1718_v19  ;;  %v1892_v60 = vadd.f32 %v1891_v11, %v1726_v30  ;;  %v1743_v18 = vmul.f32 %v3704_v32, %v1529_v28  ;;  %v1909_v23 = vadd.f32 %v1908_v25, %v1741_v5  ;;  %v1542_v30 = vld [vmem:[%s4522_s1 + $0x358] sm:$0xff]  ;;  %v1544_v28 = vld [vmem:[%s4522_s1 + $0x368] sm:$0xff] }
 0x19a   :  { %v1737_v22 = vmul.f32 %v3764_v52, %v1523_v36  ;;  %v1901_v51 = vadd.f32 %v1900_v54, %v1734_v50  ;;  %v1744_v41 = vmul.f32 %v3716_v21, %v1530_v44  ;;  %v1751_v58 = vmul.f32 %v3676_v45, %v1537_v17  ;;  %v1548_v50 = vld [vmem:[%s4522_s1 + $0x388] sm:$0xff]  ;;  %v4162_v54 = vld [vmem:[%s4526_s5] ss:$0 sm:$0xff] }
 0x19b   :  { %v1893_v33 = vadd.f32 %v1892_v60, %v1727_v24  ;;  %v1738_v34 = vmul.f32 %v3789_v2, %v1524_v0  ;;  %v1745_v61 = vmul.f32 %v3730_v27, %v1531_v6  ;;  %v1910_v19 = vadd.f32 %v1909_v23, %v1742_v53  ;;  %v1550_v60 = vld [vmem:[%s4522_s1 + $0x398] sm:$0xff] }
 0x19c   :  { %v1902_v48 = vadd.f32 %v1901_v51, %v1735_v20  ;;  %v1746_v16 = vmul.f32 %v3749_v59, %v1532_v26  ;;  %v1752_v55 = vmul.f32 %v3686_v40, %v1538_v56  ;;  %v1919_v38 = vadd.f32 %v1750_v29, %v1749_v63 }
 0x19d   :  { %1884 = vadd.xlane.f32.xlu1 %v1883_v1  ;;  %v1894_v9 = vadd.f32 %v1893_v33, %v1728_v57  ;;  %v1911_v8 = vadd.f32 %v1910_v19, %v1743_v18  ;;  %v1759_v24 = vmul.f32 %v3669_v12, %v1545_v46  ;;  %v1760_v43 = vmul.f32 %v3672_v49, %v1546_v62  ;;  %v1549_v1 = vld [vmem:[%s4522_s1 + $0x390] sm:$0xff]  ;;  %v1556_v46 = vld [vmem:[%s4522_s1 + $0x3c8] sm:$0xff] }
 0x19e   :  { %v1903_v5 = vadd.f32 %v1902_v48, %v1736_v3  ;;  %v1747_v35 = vmul.f32 %v3764_v52, %v1533_v42  ;;  %v1753_v47 = vmul.f32 %v3704_v32, %v1539_v14  ;;  %v1920_v39 = vadd.f32 %v1919_v38, %v1751_v58  ;;  %v1551_v3 = vld [vmem:[%s4522_s1 + $0x3a0] sm:$0xff]  ;;  %v1552_v42 = vld [vmem:[%s4522_s1 + $0x3a8] sm:$0xff] }
 0x19f   :  { %v1748_v20 = vmul.f32 %v3789_v2, %v1534_v10  ;;  %v1912_v13 = vadd.f32 %v1911_v8, %v1744_v41  ;;  %v1754_v57 = vmul.f32 %v3716_v21, %v1540_v15  ;;  %v1761_v11 = vmul.f32 %v3676_v45, %v1547_v7  ;;  %v1555_v58 = vld [vmem:[%s4522_s1 + $0x3c0] sm:$0xff] }
 0x1a0   :  { %v1904_v44 = vadd.f32 %v1903_v5, %v1737_v22  ;;  %v1755_v53 = vmul.f32 %v3730_v27, %v1541_v31  ;;  %v1756_v25 = vmul.f32 %v3749_v59, %v1542_v30  ;;  %v1921_v17 = vadd.f32 %v1920_v39, %v1752_v55  ;;  %v1559_v39 = vld [vmem:[%s4522_s1 + $0x3e0] sm:$0xff] }
 0x1a1   :  { %1895 = vadd.xlane.f32.xlu1 %v1894_v9  ;;  %v1913_v63 = vadd.f32 %v1912_v13, %v1745_v61  ;;  %v1757_v29 = vmul.f32 %v3764_v52, %v1543_v37  ;;  %v1762_v26 = vmul.f32 %v3686_v40, %v1548_v50  ;;  %v1930_v18 = vadd.f32 %v1760_v43, %v1759_v24  ;;  %v1553_v9 = vld [vmem:[%s4522_s1 + $0x3b0] sm:$0xff] }
 0x1a2   :  { %v1905_v22 = vadd.f32 %v1904_v44, %v1738_v34  ;;  %v1758_v51 = vmul.f32 %v3789_v2, %v1544_v28  ;;  %v1922_v41 = vadd.f32 %v1921_v17, %v1753_v47  ;;  %v1763_v61 = vmul.f32 %v3704_v32, %v1549_v1  ;;  %v1565_v1 = vld [vmem:[%s4522_s1 + $0x410] sm:$0xff] }
 0x1a3   :  { %v1914_v33 = vadd.f32 %v1913_v63, %v1746_v16  ;;  %v1931_v34 = vadd.f32 %v1930_v18, %v1761_v11  ;;  %v1764_v10 = vmul.f32 %v3716_v21, %v1550_v60  ;;  %v1765_v15 = vmul.f32 %v3730_v27, %v1551_v3  ;;  %v1557_v16 = vld [vmem:[%s4522_s1 + $0x3d0] sm:$0xff] }
 0x1a4   :  { %v1923_v48 = vadd.f32 %v1922_v41, %v1754_v57  ;;  %v1769_v31 = vmul.f32 %v3669_v12, %v1555_v58  ;;  %v1770_v30 = vmul.f32 %v3672_v49, %v1556_v46  ;;  %v1766_v47 = vmul.f32 %v3749_v59, %v1552_v42  ;;  %v1560_v41 = vld [vmem:[%s4522_s1 + $0x3e8] sm:$0xff] }
 0x1a5   :  { %1906 = vadd.xlane.f32.xlu1 %v1905_v22  ;;  %v1915_v7 = vadd.f32 %v1914_v33, %v1747_v35  ;;  %v1932_v8 = vadd.f32 %v1931_v34, %v1762_v26  ;;  %v1558_v35 = vld [vmem:[%s4522_s1 + $0x3d8] sm:$0xff]  ;;  %v1771_v57 = vmul.f32 %v3676_v45, %v1557_v16  ;;  %v1767_v17 = vmul.f32 %v3764_v52, %v1553_v9  ;;  %v1567_v33 = vld [vmem:[%s4522_s1 + $0x420] sm:$0xff] }
 0x1a6   :  { %v1924_v37 = vadd.f32 %v1923_v48, %v1755_v53  ;;  %v1773_v60 = vmul.f32 %v3704_v32, %v1559_v39  ;;  %v1941_v3 = vadd.f32 %v1770_v30, %v1769_v31  ;;  %v1566_v26 = vld [vmem:[%s4522_s1 + $0x418] sm:$0xff]  ;;  %v1779_v42 = vmul.f32 %v3669_v12, %v1565_v1  ;;  %v1564_v39 = vld [vmem:[%s4522_s1 + $0x408] sm:$0xff]  ;;  %v1571_v1 = vld [vmem:[%s4522_s1 + $0x440] sm:$0xff] }
 0x1a7   :  { %v1916_v13 = vadd.f32 %v1915_v7, %v1748_v20  ;;  %v1933_v28 = vadd.f32 %v1932_v8, %v1763_v61  ;;  %v1772_v20 = vmul.f32 %v3686_v40, %v1558_v35  ;;  %v1554_v22 = vld [vmem:[%s4522_s1 + $0x3b8] sm:$0xff]  ;;  %v1781_v9 = vmul.f32 %v3676_v45, %v1567_v33  ;;  %v1576_v8 = vld [vmem:[%s4522_s1 + $0x468] sm:$0xff]  ;;  %v1563_v35 = vld [vmem:[%s4522_s1 + $0x400] sm:$0xff] }
 0x1a8   :  { %v1925_v53 = vadd.f32 %v1924_v37, %v1756_v25  ;;  %v1768_v48 = vmul.f32 %v3789_v2, %v1554_v22  ;;  %v1562_v7 = vld [vmem:[%s4522_s1 + $0x3f8] sm:$0xff]  ;;  %v1577_v37 = vld [vmem:[%s4522_s1 + $0x470] sm:$0xff]  ;;  %v1572_v22 = vld [vmem:[%s4522_s1 + $0x448] sm:$0xff] }
 0x1a9   :  { %1917 = vadd.xlane.f32.xlu1 %v1916_v13  ;;  %v1934_v63 = vadd.f32 %v1933_v28, %v1764_v10 }
 0x1ab   :  { %v1935_v46 = vadd.f32 %v1934_v63, %v1765_v15  ;;  %v1774_v15 = vmul.f32 %v3716_v21, %v1560_v41  ;;  %v1579_v63 = vld [vmem:[%s4522_s1 + $0x480] sm:$0xff]  ;;  %v1573_v41 = vld [vmem:[%s4522_s1 + $0x450] sm:$0xff] }
 0x1ad   :  { %v1936_v10 = vadd.f32 %v1935_v46, %v1766_v47 }
 0x1af   :  { %v1937_v31 = vadd.f32 %v1936_v10, %v1767_v17  ;;  %v1790_v17 = vmul.f32 %v3672_v49, %v1576_v8  ;;  %v1787_v8 = vmul.f32 %v3764_v52, %v1573_v41 }
 0x1d5   :  { %v2308_v36 = vpop.f32.mrb[32].mxu0 }
 0x1d6   :  { %v2388_v0 = vpop.f32.mrb[32].mxu1  ;;  %v2309_v6 = vpop.f32.mrb[33].mxu0 }
 0x1d7   :  { %v2310_v23 = vadd.f32 %v2309_v6, %v2308_v36  ;;  %v2389_v56 = vpop.f32.mrb[33].mxu1 }
 0x1d8   :  { %v2390_v62 = vadd.f32 %v2389_v56, %v2388_v0  ;;  %v1926_v56 = vadd.f32 %v1925_v53, %v1757_v29  ;;  %v1578_v53 = vld [vmem:[%s4522_s1 + $0x478] sm:$0xff] }
 0x1d9   :  { %v1045_v19 = vadd.f32 %v2310_v23, %v4162_v54  ;;  %v2311_v14 = vpop.f32.mrb[34].mxu0 }
 0x1da   :  { %v2391_v55 = vpop.f32.mrb[34].mxu1  ;;  %v2312_v38 = vpop.f32.mrb[35].mxu0  ;;  %v1927_v34 = vadd.f32 %v1926_v56, %v1758_v51  ;;  %v1575_v51 = vld [vmem:[%s4522_s1 + $0x460] sm:$0xff] }
 0x1db   :  { %v4194_v24 = vadd.f32 %v2390_v62, %v1045_v19  ;;  %v2313_v43 = vadd.f32 %v2312_v38, %v2311_v14  ;;  %v2392_v5 = vpop.f32.mrb[35].mxu1  ;;  %v1942_v62 = vadd.f32 %v1941_v3, %v1771_v57  ;;  %v1561_v19 = vld [vmem:[%s4522_s1 + $0x3f0] sm:$0xff]  ;;  %v1780_v14 = vmul.f32 %v3672_v49, %v1566_v26 }
 0x1dc   :  { %v2393_v50 = vadd.f32 %v2392_v5, %v2391_v55  ;;  %v1568_v55 = vld [vmem:[%s4522_s1 + $0x428] sm:$0xff]  ;;  %1928 = vadd.xlane.f32.xlu1 %v1927_v34  ;;  %v1775_v30 = vmul.f32 %v3730_v27, %v1561_v19  ;;  %v1569_v5 = vld [vmem:[%s4522_s1 + $0x430] sm:$0xff]  ;;  %v1789_v28 = vmul.f32 %v3669_v12, %v1575_v51  ;;  %v1938_v57 = vadd.f32 %v1937_v31, %v1768_v48  ;;  %v1574_v48 = vld [vmem:[%s4522_s1 + $0x458] sm:$0xff] }
 0x1dd   :  { %v2259_v11 = vmul.f32 -1.442695, %v4194_v24  ;;  %v1050_v36 = vadd.f32 %v2313_v43, %v4162_v54  ;;  %v2314_v44 = vpop.f32.mrb[36].mxu0  ;;  %v1943_v16 = vadd.f32 %v1942_v62, %v1772_v20  ;;  %v1952_v13 = vadd.f32 %v1780_v14, %v1779_v42  ;;  %v1580_v34 = vld [vmem:[%s4522_s1 + $0x488] sm:$0xff]  ;;  %v1587_v14 = vld [vmem:[%s4522_s1 + $0x4c0] sm:$0xff] }
 0x1de   :  { %v2394_v0 = vpop.f32.mrb[36].mxu1  ;;  %v2315_v6 = vpop.f32.mrb[37].mxu0  ;;  %v1791_v20 = vmul.f32 %v3676_v45, %v1577_v37  ;;  %v1778_v3 = vmul.f32 %v3789_v2, %v1564_v39  ;;  %v1792_v62 = vmul.f32 %v3686_v40, %v1578_v53  ;;  %v1963_v33 = vadd.f32 %v1790_v17, %v1789_v28  ;;  %v1588_v31 = vld [vmem:[%s4522_s1 + $0x4c8] sm:$0xff] }
 0x1df   :  { %2774 = vpow2.f32 %v2259_v11  ;;  %v4215_v25 = vadd.f32 %v2393_v50, %v1050_v36  ;;  %v2316_v18 = vadd.f32 %v2315_v6, %v2314_v44  ;;  %v2395_v23 = vpop.f32.mrb[37].mxu1  ;;  %v1944_v43 = vadd.f32 %v1943_v16, %v1773_v60  ;;  %v1570_v44 = vld [vmem:[%s4522_s1 + $0x438] sm:$0xff]  ;;  %v1584_v53 = vld [vmem:[%s4522_s1 + $0x4a8] sm:$0xff] }
 0x1e0   :  { %v2396_v58 = vadd.f32 %v2395_v23, %v2394_v0  ;;  %v1782_v50 = vmul.f32 %v3686_v40, %v1568_v55  ;;  %v1776_v11 = vmul.f32 %v3749_v59, %v1562_v7  ;;  %v1783_v0 = vmul.f32 %v3704_v32, %v1569_v5  ;;  %1939 = vadd.xlane.f32.xlu1 %v1938_v57  ;;  %v1586_v23 = vld [vmem:[%s4522_s1 + $0x4b8] sm:$0xff] }
 0x1e1   :  { %v2260_v61 = vmul.f32 -1.442695, %v4215_v25  ;;  %v1055_v29 = vadd.f32 %v2316_v18, %v4162_v54  ;;  %v1945_v36 = vadd.f32 %v1944_v43, %v1774_v15  ;;  %v1953_v6 = vadd.f32 %v1952_v13, %v1781_v9  ;;  %v1585_v18 = vld [vmem:[%s4522_s1 + $0x4b0] sm:$0xff]  ;;  %v1582_v5 = vld [vmem:[%s4522_s1 + $0x498] sm:$0xff] }
 0x1e2   :  { %v1777_v60 = vmul.f32 %v3764_v52, %v1563_v35  ;;  %v1793_v19 = vmul.f32 %v3704_v32, %v1579_v63  ;;  %v1581_v15 = vld [vmem:[%s4522_s1 + $0x490] sm:$0xff]  ;;  %v1964_v16 = vadd.f32 %v1963_v33, %v1791_v20  ;;  %v1799_v55 = vmul.f32 %v3669_v12, %v1585_v18  ;;  %v1590_v20 = vld [vmem:[%s4522_s1 + $0x4d8] sm:$0xff] }
 0x1e3   :  { %2776 = vpow2.f32 %v2260_v61  ;;  %v4241_v38 = vadd.f32 %v2396_v58, %v1055_v29  ;;  %v1946_v26 = vadd.f32 %v1945_v36, %v1775_v30  ;;  %v1784_v58 = vmul.f32 %v3716_v21, %v1570_v44  ;;  %v1583_v44 = vld [vmem:[%s4522_s1 + $0x4a0] sm:$0xff] }
 0x1e4   :  { %v1954_v46 = vadd.f32 %v1953_v6, %v1782_v50  ;;  %v1785_v29 = vmul.f32 %v3730_v27, %v1571_v1  ;;  %v1800_v51 = vmul.f32 %v3672_v49, %v1586_v23  ;;  %v1786_v9 = vmul.f32 %v3749_v59, %v1572_v22  ;;  %v1589_v49 = vld [vmem:[%s4522_s1 + $0x4d0] sm:$0xff] }
 0x1e5   :  { %v2261_v47 = vmul.f32 -1.442695, %v4241_v38  ;;  %v1947_v61 = vadd.f32 %v1946_v26, %v1776_v11  ;;  %v1794_v12 = vmul.f32 %v3716_v21, %v1580_v34  ;;  %v1965_v37 = vadd.f32 %v1964_v16, %v1792_v62 }
 0x1e6   :  { %v1955_v10 = vadd.f32 %v1954_v46, %v1783_v0  ;;  %v1788_v13 = vmul.f32 %v3789_v2, %v1574_v48  ;;  %v1795_v28 = vmul.f32 %v3730_v27, %v1581_v15  ;;  %v1974_v1 = vadd.f32 %v1800_v51, %v1799_v55 }
 0x1e7   :  { %2778 = vpow2.f32 %v2261_v47  ;;  %v1948_v7 = vadd.f32 %v1947_v61, %v1777_v60  ;;  %v1801_v47 = vmul.f32 %v3676_v45, %v1587_v14  ;;  %v1966_v17 = vadd.f32 %v1965_v37, %v1793_v19 }
 0x1e8   :  { %v1956_v43 = vadd.f32 %v1955_v10, %v1784_v58  ;;  %v1802_v45 = vmul.f32 %v3686_v40, %v1588_v31  ;;  %v1796_v63 = vmul.f32 %v3749_v59, %v1582_v5  ;;  %v1803_v60 = vmul.f32 %v3704_v32, %v1589_v49  ;;  %v1591_v40 = vld [vmem:[%s4522_s1 + $0x4e0] sm:$0xff]  ;;  %v1592_v10 = vld [vmem:[%s4522_s1 + $0x4e8] sm:$0xff] }
 0x1e9   :  { %v2775_v56 = vpop.eup %2774  ;;  %v1949_v50 = vadd.f32 %v1948_v7, %v1778_v3  ;;  %v1967_v23 = vadd.f32 %v1966_v17, %v1794_v12  ;;  %v1797_v46 = vmul.f32 %v3764_v52, %v1583_v44  ;;  %v1798_v62 = vmul.f32 %v3789_v2, %v1584_v53  ;;  %v1593_v7 = vld [vmem:[%s4522_s1 + $0x4f0] sm:$0xff] }
 0x1ea   :  { %v1316_v42 = vadd.f32 1.0, %v2775_v56  ;;  %v1957_v36 = vadd.f32 %v1956_v43, %v1785_v29  ;;  %v1975_v56 = vadd.f32 %v1974_v1, %v1801_v47  ;;  %v1804_v29 = vmul.f32 %v3716_v21, %v1590_v20  ;;  %v4362_v43 = vld [vmem:[%s4527_s6] ss:$0 sm:$0xff] }
 0x1eb   :  { %1950 = vadd.xlane.f32.xlu1 %v1949_v50  ;;  %v1968_v61 = vadd.f32 %v1967_v23, %v1795_v28  ;;  %v1805_v15 = vmul.f32 %v3730_v27, %v1591_v40  ;;  %v1806_v49 = vmul.f32 %v3749_v59, %v1592_v10  ;;  %v1807_v28 = vmul.f32 %v3764_v52, %v1593_v7 }
 0x1ec   :  { %2780 = vrcp.f32 %v1316_v42  ;;  %v1958_v18 = vadd.f32 %v1957_v36, %v1786_v9  ;;  %v1976_v34 = vadd.f32 %v1975_v56, %v1802_v45 }
 0x1ed   :  { %v2777_v30 = vpop.eup %2776  ;;  %v1969_v51 = vadd.f32 %v1968_v61, %v1796_v63 }
 0x1ee   :  { %v1317_v35 = vadd.f32 1.0, %v2777_v30  ;;  %v2317_v39 = vpop.f32.mrb[38].mxu0  ;;  %v1959_v32 = vadd.f32 %v1958_v18, %v1787_v8  ;;  %v1977_v21 = vadd.f32 %v1976_v34, %v1803_v60 }
 0x1ef   :  { %v2397_v57 = vpop.f32.mrb[38].mxu1  ;;  %v2318_v11 = vpop.f32.mrb[39].mxu0  ;;  %v1970_v37 = vadd.f32 %v1969_v51, %v1797_v46 }
 0x1f0   :  { %2782 = vrcp.f32 %v1317_v35  ;;  %v2319_v0 = vadd.f32 %v2318_v11, %v2317_v39  ;;  %v2398_v6 = vpop.f32.mrb[39].mxu1  ;;  %v1960_v55 = vadd.f32 %v1959_v32, %v1788_v13  ;;  %v1978_v47 = vadd.f32 %v1977_v21, %v1804_v29  ;;  %v1594_v13 = vld [vmem:[%s4522_s1 + $0x4f8] sm:$0xff] }
 0x1f1   :  { %v2779_v3 = vpop.eup %2778  ;;  %v2399_v26 = vadd.f32 %v2398_v6, %v2397_v57  ;;  %v1808_v45 = vmul.f32 %v3789_v2, %v1594_v13 }
 0x1f2   :  { %v1318_v22 = vadd.f32 1.0, %v2779_v3  ;;  %v1060_v41 = vadd.f32 %v2319_v0, %v4162_v54  ;;  %v2320_v58 = vpop.f32.mrb[40].mxu0  ;;  %1961 = vadd.xlane.f32.xlu1 %v1960_v55  ;;  %v1979_v36 = vadd.f32 %v1978_v47, %v1805_v15 }
 0x1f3   :  { %v2400_v33 = vpop.f32.mrb[40].mxu1  ;;  %v2321_v42 = vpop.f32.mrb[41].mxu0 }
 0x1f4   :  { %2784 = vrcp.f32 %v1318_v22  ;;  %v4348_v19 = vadd.f32 %v2399_v26, %v1060_v41  ;;  %v2322_v14 = vadd.f32 %v2321_v42, %v2320_v58  ;;  %v2401_v48 = vpop.f32.mrb[41].mxu1  ;;  %v1980_v1 = vadd.f32 %v1979_v36, %v1806_v49 }
 0x1f5   :  { %v2402_v16 = vadd.f32 %v2401_v48, %v2400_v33 }
 0x1f6   :  { %v2781_v9 = vpop.eup %2780  ;;  %v2262_v8 = vmul.f32 -1.442695, %v4348_v19  ;;  %v1065_v31 = vadd.f32 %v2322_v14, %v4162_v54  ;;  %v2323_v30 = vpop.f32.mrb[42].mxu0  ;;  %v1981_v6 = vadd.f32 %v1980_v1, %v1807_v28 }
 0x1f7   :  { %v2403_v27 = vpop.f32.mrb[42].mxu1  ;;  %v2324_v5 = vpop.f32.mrb[43].mxu0  ;;  %v1364_v12 = vmul.f32 %v2781_v9, %v4194_v24  ;;  %v1971_v24 = vadd.f32 %v1970_v37, %v1798_v62 }
 0x1f8   :  { %2786 = vpow2.f32 %v2262_v8  ;;  %v4366_v35 = vadd.f32 %v2402_v16, %v1065_v31  ;;  %v2325_v39 = vadd.f32 %v2324_v5, %v2323_v30  ;;  %v2404_v50 = vpop.f32.mrb[43].mxu1  ;;  %v1982_v3 = vadd.f32 %v1981_v6, %v1808_v45 }
 0x1f9   :  { %v2405_v57 = vadd.f32 %v2404_v50, %v2403_v27  ;;  %v1387_v11 = vmul.f32 %v4362_v43, %v1364_v12  ;;  %1972 = vadd.xlane.f32.xlu1 %v1971_v24 }
 0x1fa   :  { %v2783_v44 = vpop.eup %2782  ;;  %v2263_v59 = vmul.f32 -1.442695, %v4366_v35  ;;  %v1070_v53 = vadd.f32 %v2325_v39, %v4162_v54 }
 0x1fb   :  { %1403 = vadd.xlane.f32.xlu0 %v1387_v11  ;;  %v1365_v17 = vmul.f32 %v2783_v44, %v4215_v25 }
 0x1fc   :  { %2788 = vpow2.f32 %v2263_v59  ;;  %v1215_v0 = vadd.f32 %v2405_v57, %v1070_v53 }
 0x1fd   :  { %v1388_v52 = vmul.f32 %v4362_v43, %v1365_v17  ;;  %1983 = vadd.xlane.f32.xlu1 %v1982_v3 }
 0x1fe   :  { %v2785_v63 = vpop.eup %2784  ;;  %v2264_v20 = vmul.f32 -1.442695, %v1215_v0 }
 0x1ff   :  { %1405 = vadd.xlane.f32.xlu0 %v1388_v52  ;;  %v1366_v60 = vmul.f32 %v2785_v63, %v4241_v38 }
 0x200   :  { %2790 = vpow2.f32 %v2264_v20 }
 0x201   :  { %v1389_v26 = vmul.f32 %v4362_v43, %v1366_v60 }
 0x202   :  { %v2787_v25 = vpop.eup %2786 }
 0x203   :  { %v1319_v18 = vadd.f32 1.0, %v2787_v25  ;;  %1407 = vadd.xlane.f32.xlu0 %v1389_v26 }
 0x205   :  { %2792 = vrcp.f32 %v1319_v18 }
 0x206   :  { %v2789_v2 = vpop.eup %2788 }
 0x207   :  { %v1320_v23 = vadd.f32 1.0, %v2789_v2  ;;  %v2326_v40 = vpop.f32.mrb[44].mxu0 }
 0x208   :  { %v2406_v56 = vpop.f32.mrb[44].mxu1  ;;  %v2327_v22 = vpop.f32.mrb[45].mxu0 }
 0x209   :  { %2794 = vrcp.f32 %v1320_v23  ;;  %v2328_v41 = vadd.f32 %v2327_v22, %v2326_v40  ;;  %v2407_v58 = vpop.f32.mrb[45].mxu1 }
 0x20a   :  { %v2791_v46 = vpop.eup %2790  ;;  %v2408_v62 = vadd.f32 %v2407_v58, %v2406_v56 }
 0x20b   :  { %v1321_v38 = vadd.f32 1.0, %v2791_v46  ;;  %v1075_v33 = vadd.f32 %v2328_v41, %v4162_v54  ;;  %v2329_v42 = vpop.f32.mrb[46].mxu0 }
 0x20c   :  { %v2409_v32 = vpop.f32.mrb[46].mxu1  ;;  %v2330_v61 = vpop.f32.mrb[47].mxu0 }
 0x20d   :  { %2796 = vrcp.f32 %v1321_v38  ;;  %v1220_v29 = vadd.f32 %v2408_v62, %v1075_v33  ;;  %v2331_v34 = vadd.f32 %v2330_v61, %v2329_v42  ;;  %v2410_v14 = vpop.f32.mrb[47].mxu1 }
 0x20e   :  { %v2411_v48 = vadd.f32 %v2410_v14, %v2409_v32 }
 0x20f   :  { %v2793_v10 = vpop.eup %2792  ;;  %v2265_v15 = vmul.f32 -1.442695, %v1220_v29  ;;  %v1080_v16 = vadd.f32 %v2331_v34, %v4162_v54  ;;  %v2332_v55 = vpop.f32.mrb[48].mxu0 }
 0x210   :  { %v2412_v51 = vpop.f32.mrb[48].mxu1  ;;  %v2333_v7 = vpop.f32.mrb[49].mxu0  ;;  %v1367_v21 = vmul.f32 %v2793_v10, %v4348_v19 }
 0x211   :  { %2798 = vpow2.f32 %v2265_v15  ;;  %v4383_v9 = vadd.f32 %v2411_v48, %v1080_v16  ;;  %v2334_v8 = vadd.f32 %v2333_v7, %v2332_v55  ;;  %v2413_v31 = vpop.f32.mrb[49].mxu1 }
 0x212   :  { %v2414_v30 = vadd.f32 %v2413_v31, %v2412_v51  ;;  %v1390_v27 = vmul.f32 %v4362_v43, %v1367_v21 }
 0x213   :  { %v2795_v5 = vpop.eup %2794  ;;  %v2266_v12 = vmul.f32 -1.442695, %v4383_v9  ;;  %v1085_v37 = vadd.f32 %v2334_v8, %v4162_v54  ;;  %v2335_v49 = vpop.f32.mrb[50].mxu0 }
 0x214   :  { %v2336_v47 = vpop.f32.mrb[51].mxu0  ;;  %1409 = vadd.xlane.f32.xlu0 %v1390_v27  ;;  %v1368_v39 = vmul.f32 %v2795_v5, %v4366_v35 }
 0x215   :  { %2800 = vpow2.f32 %v2266_v12  ;;  %v1230_v19 = vadd.f32 %v2414_v30, %v1085_v37  ;;  %v2337_v50 = vadd.f32 %v2336_v47, %v2335_v49 }
 0x216   :  { %v1391_v13 = vmul.f32 %v4362_v43, %v1368_v39 }
 0x217   :  { %v2797_v28 = vpop.eup %2796  ;;  %v2267_v57 = vmul.f32 -1.442695, %v1230_v19  ;;  %v1090_v35 = vadd.f32 %v2337_v50, %v4162_v54 }
 0x218   :  { %1411 = vadd.xlane.f32.xlu0 %v1391_v13  ;;  %v1369_v11 = vmul.f32 %v2797_v28, %v1215_v0 }
 0x219   :  { %2802 = vpow2.f32 %v2267_v57 }
 0x21a   :  { %v1392_v24 = vmul.f32 %v4362_v43, %v1369_v11 }
 0x21b   :  { %v2799_v36 = vpop.eup %2798 }
 0x21c   :  { %v1322_v44 = vadd.f32 1.0, %v2799_v36  ;;  %1413 = vadd.xlane.f32.xlu0 %v1392_v24 }
 0x21e   :  { %2804 = vrcp.f32 %v1322_v44 }
 0x21f   :  { %v2801_v59 = vpop.eup %2800 }
 0x220   :  { %v1323_v53 = vadd.f32 1.0, %v2801_v59 }
 0x221   :  { %v2415_v17 = vpop.f32.mrb[50].mxu1 }
 0x222   :  { %2806 = vrcp.f32 %v1323_v53  ;;  %v2416_v45 = vpop.f32.mrb[51].mxu1 }
 0x223   :  { %v2803_v1 = vpop.eup %2802  ;;  %v2417_v52 = vadd.f32 %v2416_v45, %v2415_v17 }
 0x224   :  { %v1324_v6 = vadd.f32 1.0, %v2803_v1  ;;  %v2338_v63 = vpop.f32.mrb[52].mxu0 }
 0x225   :  { %v4392_v20 = vadd.f32 %v2417_v52, %v1090_v35  ;;  %v2418_v0 = vpop.f32.mrb[52].mxu1  ;;  %v2339_v60 = vpop.f32.mrb[53].mxu0 }
 0x226   :  { %2808 = vrcp.f32 %v1324_v6  ;;  %v2340_v3 = vadd.f32 %v2339_v60, %v2338_v63  ;;  %v2419_v26 = vpop.f32.mrb[53].mxu1 }
 0x227   :  { %v2268_v25 = vmul.f32 -1.442695, %v4392_v20  ;;  %v2420_v18 = vadd.f32 %v2419_v26, %v2418_v0 }
 0x228   :  { %v2805_v2 = vpop.eup %2804  ;;  %v1095_v23 = vadd.f32 %v2340_v3, %v4162_v54  ;;  %v2341_v40 = vpop.f32.mrb[54].mxu0 }
 0x229   :  { %2810 = vpow2.f32 %v2268_v25  ;;  %v2421_v56 = vpop.f32.mrb[54].mxu1  ;;  %v2342_v22 = vpop.f32.mrb[55].mxu0  ;;  %v1370_v41 = vmul.f32 %v2805_v2, %v1220_v29 }
 0x22a   :  { %v4396_v58 = vadd.f32 %v2420_v18, %v1095_v23  ;;  %v2343_v46 = vadd.f32 %v2342_v22, %v2341_v40  ;;  %v2422_v62 = vpop.f32.mrb[55].mxu1 }
 0x22b   :  { %v2423_v38 = vadd.f32 %v2422_v62, %v2421_v56  ;;  %v1393_v33 = vmul.f32 %v4362_v43, %v1370_v41 }
 0x22c   :  { %v2807_v42 = vpop.eup %2806  ;;  %v2269_v32 = vmul.f32 -1.442695, %v4396_v58  ;;  %v1100_v61 = vadd.f32 %v2343_v46, %v4162_v54  ;;  %v2344_v34 = vpop.f32.mrb[56].mxu0 }
 0x22d   :  { %v2424_v14 = vpop.f32.mrb[56].mxu1  ;;  %v2345_v48 = vpop.f32.mrb[57].mxu0  ;;  %1415 = vadd.xlane.f32.xlu0 %v1393_v33  ;;  %v1371_v10 = vmul.f32 %v2807_v42, %v4383_v9 }
 0x22e   :  { %2812 = vpow2.f32 %v2269_v32  ;;  %v4402_v29 = vadd.f32 %v2423_v38, %v1100_v61  ;;  %v2346_v15 = vadd.f32 %v2345_v48, %v2344_v34  ;;  %v2425_v16 = vpop.f32.mrb[57].mxu1 }
 0x22f   :  { %v2426_v55 = vadd.f32 %v2425_v16, %v2424_v14  ;;  %v1394_v51 = vmul.f32 %v4362_v43, %v1371_v10 }
 0x230   :  { %v2809_v7 = vpop.eup %2808  ;;  %v2270_v21 = vmul.f32 -1.442695, %v4402_v29  ;;  %v1105_v8 = vadd.f32 %v2346_v15, %v4162_v54 }
 0x231   :  { %1417 = vadd.xlane.f32.xlu0 %v1394_v51  ;;  %v1372_v31 = vmul.f32 %v2809_v7, %v1230_v19 }
 0x232   :  { %2814 = vpow2.f32 %v2270_v21  ;;  %v1250_v30 = vadd.f32 %v2426_v55, %v1105_v8 }
 0x233   :  { %v2811_v27 = vpop.eup %2810  ;;  %v1395_v9 = vmul.f32 %v4362_v43, %v1372_v31 }
 0x234   :  { %v1325_v5 = vadd.f32 1.0, %v2811_v27  ;;  %v2271_v12 = vmul.f32 -1.442695, %v1250_v30 }
 0x235   :  { %1419 = vadd.xlane.f32.xlu0 %v1395_v9 }
 0x236   :  { %2816 = vrcp.f32 %v1325_v5  ;;  %v1819_v5 = vpop.xlane.xlu1 %1818 }
 0x237   :  { %2818 = vpow2.f32 %v2271_v12 }
 0x238   :  { %v2813_v37 = vpop.eup %2812 }
 0x239   :  { %v1326_v49 = vadd.f32 1.0, %v2813_v37 }
 0x23a   :  { %v1830_v37 = vpop.xlane.xlu1 %1829 }
 0x23b   :  { %2820 = vrcp.f32 %v1326_v49 }
 0x23c   :  { %v2815_v47 = vpop.eup %2814 }
 0x23d   :  { %v1327_v39 = vadd.f32 1.0, %v2815_v47  ;;  %v2347_v50 = vpop.f32.mrb[58].mxu0 }
 0x23e   :  { %v2427_v13 = vpop.f32.mrb[58].mxu1  ;;  %v2348_v28 = vpop.f32.mrb[59].mxu0 }
 0x23f   :  { %2822 = vrcp.f32 %v1327_v39  ;;  %v2349_v19 = vadd.f32 %v2348_v28, %v2347_v50  ;;  %v2428_v57 = vpop.f32.mrb[59].mxu1  ;;  %v1841_v47 = vpop.xlane.xlu1 %1840 }
 0x240   :  { %v2817_v11 = vpop.eup %2816  ;;  %v2429_v24 = vadd.f32 %v2428_v57, %v2427_v13 }
 0x241   :  { %v2819_v36 = vpop.eup %2818  ;;  %v1110_v44 = vadd.f32 %v2349_v19, %v4162_v54  ;;  %v2350_v59 = vpop.f32.mrb[60].mxu0  ;;  %v1373_v53 = vmul.f32 %v2817_v11, %v4392_v20 }
 0x242   :  { %v1328_v17 = vadd.f32 1.0, %v2819_v36  ;;  %v2430_v35 = vpop.f32.mrb[60].mxu1  ;;  %v2351_v45 = vpop.f32.mrb[61].mxu0 }
 0x243   :  { %v1255_v1 = vadd.f32 %v2429_v24, %v1110_v44  ;;  %v2352_v52 = vadd.f32 %v2351_v45, %v2350_v59  ;;  %v2431_v6 = vpop.f32.mrb[61].mxu1  ;;  %v1396_v63 = vmul.f32 %v4362_v43, %v1373_v53  ;;  %v1852_v50 = vpop.xlane.xlu1 %1851 }
 0x244   :  { %2824 = vrcp.f32 %v1328_v17  ;;  %v2432_v0 = vadd.f32 %v2431_v6, %v2430_v35  ;;  %v4563_v6 = vlaneseq }
 0x245   :  { %v2821_v60 = vpop.eup %2820  ;;  %v2272_v3 = vmul.f32 -1.442695, %v1255_v1  ;;  %v1115_v26 = vadd.f32 %v2352_v52, %v4162_v54  ;;  %v2353_v25 = vpop.f32.mrb[62].mxu0  ;;  %1421 = vadd.xlane.f32.xlu0 %v1396_v63 }
 0x246   :  { %v2433_v18 = vpop.f32.mrb[62].mxu1  ;;  %v2354_v2 = vpop.f32.mrb[63].mxu0  ;;  %v1374_v20 = vmul.f32 %v2821_v60, %v4396_v58  ;;  %v4424_v63 = vand.u32 127, %v4563_v6 }
 0x247   :  { %2826 = vpow2.f32 %v2272_v3  ;;  %v1260_v23 = vadd.f32 %v2432_v0, %v1115_v26  ;;  %v2355_v40 = vadd.f32 %v2354_v2, %v2353_v25  ;;  %v2434_v56 = vpop.f32.mrb[63].mxu1  ;;  %v1863_v28 = vpop.xlane.xlu1 %1862  ;;  %v4432_v26 = vstv %s4529_s8  ;;  %s2863_s8 = smov [#allocation3]  }
 0x248   :  { %v2435_v22 = vadd.f32 %v2434_v56, %v2433_v18  ;;  %v1397_v41 = vmul.f32 %v4362_v43, %v1374_v20  ;;  %v2041_v0 = vadd.s32 4294967288, %v4424_v63  ;;  %v2048_v60 = vadd.s32 4294967280, %v4424_v63  ;;  %s2154_s13 = sshll.u32 %s2863_s8, 4  ;;  %s2155_s13 = int_to_ptr.vmem [resolvable:$true] %s2154_s13 }
 0x249   :  { %v2823_v46 = vpop.eup %2822  ;;  %v2273_v62 = vmul.f32 -1.442695, %v1260_v23  ;;  %v1120_v38 = vadd.f32 %v2355_v40, %v4162_v54  ;;  %v2055_v3 = vadd.s32 4294967272, %v4424_v63  ;;  %v2062_v25 = vadd.s32 4294967264, %v4424_v63  ;;  %s2838_s14 = scalar_lea.vmem %s2155_s13, 16  ;;  %s2842_s7 = scalar_lea.vmem %s2155_s13, 32 }
 0x24a   :  { %1423 = vadd.xlane.f32.xlu0 %v1397_v41  ;;  %v1375_v33 = vmul.f32 %v2823_v46, %v4402_v29  ;;  %v4436_v18 = vadd.s32 4294967256, %v4424_v63  ;;  %v2044_v40 = vsub.s32 %v2041_v0, %v4560_v4  ;;  %v2051_v41 = vsub.s32 %v2048_v60, %v4560_v4  ;;  %p2839_p0 = scmp.ne.s32.totalorder %s2155_s13, %s2838_s14  ;;  %p2843_p1 = scmp.lt.s32.totalorder %s2155_s13, %s2155_s13 }
 0x24b   :  { %2828 = vpow2.f32 %v2273_v62  ;;  %v1265_v42 = vadd.f32 %v2435_v22, %v1120_v38  ;;  %v1874_v57 = vpop.xlane.xlu1 %1873  ;;  %v4442_v22 = vadd.s32 4294967248, %v4424_v63  ;;  %v4446_v62 = vadd.s32 4294967240, %v4424_v63  ;;  %p2844_p2 = scmp.lt.s32.totalorder %s2842_s7, %s2838_s14 }
 0x24c   :  { %v1398_v32 = vmul.f32 %v4362_v43, %v1375_v33  ;;  %v4449_v38 = vadd.s32 4294967232, %v4424_v63 }
 0x24d   :  { %v2274_v61 = vmul.f32 -1.442695, %v1265_v42  ;;  %p2845_p3 = por %p2844_p2, %p2843_p1 }
 0x24e   :  { %v2825_v58 = vpop.eup %2824  ;;  %1425 = vadd.xlane.f32.xlu0 %v1398_v32 }
 0x24f   :  { %2830 = vpow2.f32 %v2274_v61  ;;  %v1376_v34 = vmul.f32 %v2825_v58, %v1250_v30  ;;  %v1885_v24 = vpop.xlane.xlu1 %1884  ;;  %v4453_v61 = vadd.s32 4294967224, %v4424_v63  ;;  %v2065_v58 = vsub.s32 %v2062_v25, %v4560_v4  ;;  %p2846_p4 = pnand %p2845_p3, %p2839_p0 }
 0x251   :  { %v2827_v14 = vpop.eup %2826  ;;  %v1399_v48 = vmul.f32 %v4362_v43, %v1376_v34 }
 0x252   :  { %v1329_v10 = vadd.f32 1.0, %v2827_v14  ;;  %v2072_v14 = vsub.s32 %v4436_v18, %v4560_v4 }
 0x253   :  { %1427 = vadd.xlane.f32.xlu0 %v1399_v48  ;;  %v1896_v44 = vpop.xlane.xlu1 %1895  ;;  %v4459_v48 = vadd.s32 4294967216, %v4424_v63 }
 0x254   :  { %2832 = vrcp.f32 %v1329_v10 }
 0x255   :  { %v2829_v15 = vpop.eup %2828 }
 0x256   :  { %v1330_v54 = vadd.f32 1.0, %v2829_v15 }
 0x257   :  { %v1907_v53 = vpop.xlane.xlu1 %1906 }
 0x258   :  { %2834 = vrcp.f32 %v1330_v54  ;;  %v2079_v54 = vsub.s32 %v4442_v22, %v4560_v4 }
 0x259   :  { %v2831_v16 = vpop.eup %2830 }
 0x25a   :  { %v1331_v29 = vadd.f32 1.0, %v2831_v16  ;;  %v4465_v16 = vadd.s32 4294967208, %v4424_v63 }
 0x25c   :  { %2836 = vrcp.f32 %v1331_v29 }
 0x25e   :  { %v2833_v55 = vpop.eup %2832 }
 0x25f   :  { %v1377_v51 = vmul.f32 %v2833_v55, %v1255_v1 }
 0x261   :  { %v1400_v7 = vmul.f32 %v4362_v43, %v1377_v51  ;;  %v2086_v51 = vsub.s32 %v4446_v62, %v4560_v4 }
 0x262   :  { %v2835_v21 = vpop.eup %2834 }
 0x263   :  { %1429 = vadd.xlane.f32.xlu0 %v1400_v7  ;;  %v1378_v8 = vmul.f32 %v2835_v21, %v1260_v23  ;;  %v2039_v23 = vsub.s32 %v4424_v63, %v4560_v4  ;;  %v2093_v7 = vsub.s32 %v4449_v38, %v4560_v4  ;;  %v2139_v38 = vadd.s32 4294967176, %v4424_v63 }
 0x265   :  { %v1401_v31 = vmul.f32 %v4362_v43, %v1378_v8 }
 0x266   :  { %v2837_v30 = vpop.eup %2836 }
 0x267   :  { %1431 = vadd.xlane.f32.xlu0 %v1401_v31  ;;  %v1379_v27 = vmul.f32 %v2837_v30, %v1265_v42  ;;  %v2058_v42 = vsub.s32 %v2055_v3, %v4560_v4 }
 0x269   :  { %v1402_v9 = vmul.f32 %v4362_v43, %v1379_v27  ;;  %v1918_v43 = vpop.xlane.xlu1 %1917 }
 0x26b   :  { %1433 = vadd.xlane.f32.xlu0 %v1402_v9  ;;  %v2100_v9 = vsub.s32 %v4453_v61, %v4560_v4 }
 0x26d   :  { %v1929_v45 = vpop.xlane.xlu1 %1928 }
 0x271   :  { %v4421_v52 = vpop.xlane.xlu1 %1939 }
 0x278   :  { %v1951_v20 = vpop.xlane.xlu1 %1950 }
 0x27f   :  { %v1962_v8 = vpop.xlane.xlu1 %1961 }
 0x286   :  { %v1973_v0 = vpop.xlane.xlu1 %1972 }
 0x288   :  { %v1404_v12 = vpop.xlane.xlu0 %1403 }
 0x289   :  { %v1985_v33 = vadd.f32 %v1819_v5, %v1404_v12 }
 0x28b   :  { %v2003_v31 = vadd.f32 %v4432_v26, %v1985_v33 }
 0x28c   :  { %v1406_v49 = vpop.xlane.xlu0 %1405 }
 0x28d   :  { %v1986_v56 = vadd.f32 %v1830_v37, %v1406_v49  ;;  %v2107_v37 = vsub.s32 %v4459_v48, %v4560_v4  ;;  %v2118_v49 = vadd.s32 4294967200, %v4424_v63  ;;  %v1984_v48 = vpop.xlane.xlu1 %1983 }
 0x28f   :  { %v2004_v10 = vadd.f32 %v4432_v26, %v1986_v56 }
 0x290   :  { %v1408_v39 = vpop.xlane.xlu0 %1407 }
 0x291   :  { %v1987_v46 = vadd.f32 %v1841_v47, %v1408_v39  ;;  %v2045_v47 = vrot.slane %v2004_v10, %v2044_v40 }
 0x293   :  { %v2005_v29 = vadd.f32 %v4432_v26, %v1987_v46 }
 0x2a1   :  { %v1410_v13 = vpop.xlane.xlu0 %1409 }
 0x2a2   :  { %v1988_v32 = vadd.f32 %v1852_v50, %v1410_v13  ;;  %v2114_v13 = vsub.s32 %v4465_v16, %v4560_v4 }
 0x2a4   :  { %v2006_v30 = vadd.f32 %v4432_v26, %v1988_v32 }
 0x2a5   :  { %v1412_v19 = vpop.xlane.xlu0 %1411 }
 0x2a6   :  { %v1989_v34 = vadd.f32 %v1863_v28, %v1412_v19  ;;  %v2052_v28 = vrot.slane %v2005_v29, %v2051_v41 }
 0x2a8   :  { %v2007_v5 = vadd.f32 %v4432_v26, %v1989_v34 }
 0x2a9   :  { %v1414_v11 = vpop.xlane.xlu0 %1413 }
 0x2aa   :  { %v1990_v15 = vadd.f32 %v1874_v57, %v1414_v11  ;;  %v2125_v11 = vadd.s32 4294967192, %v4424_v63 }
 0x2ac   :  { %v2008_v39 = vadd.f32 %v4432_v26, %v1990_v15  ;;  %v2128_v56 = vsub.s32 %v2125_v11, %v4560_v4 }
 0x2ae   :  { %v2073_v3 = vrot.slane %v2008_v39, %v2072_v14 }
 0x2ba   :  { %v1416_v36 = vpop.xlane.xlu0 %1415 }
 0x2bb   :  { %v1991_v55 = vadd.f32 %v1885_v24, %v1416_v36  ;;  %v2040_v24 = vrot.slane %v2003_v31, %v2039_v23  ;;  %v2059_v36 = vrot.slane %v2006_v30, %v2058_v42 }
 0x2bd   :  { %v2009_v19 = vadd.f32 %v4432_v26, %v1991_v55  ;;  %v2047_v60 = vsel %vm2046_vm1, %v2045_v47, %v2040_v24 }
 0x2be   :  { %v1418_v59 = vpop.xlane.xlu0 %1417  ;;  %v2054_v25 = vsel %vm2053_vm2, %v2052_v28, %v2047_v60 }
 0x2bf   :  { %v1992_v27 = vadd.f32 %v1896_v44, %v1418_v59  ;;  %v2080_v18 = vrot.slane %v2009_v19, %v2079_v54 }
 0x2c1   :  { %v2010_v44 = vadd.f32 %v4432_v26, %v1992_v27 }
 0x2c2   :  { %v1420_v17 = vpop.xlane.xlu0 %1419 }
 0x2c3   :  { %v1993_v12 = vadd.f32 %v1907_v53, %v1420_v17  ;;  %v2066_v53 = vrot.slane %v2007_v5, %v2065_v58  ;;  %v2087_v40 = vrot.slane %v2010_v44, %v2086_v51 }
 0x2c5   :  { %v2011_v17 = vadd.f32 %v4432_v26, %v1993_v12 }
 0x2c7   :  { %v2094_v41 = vrot.slane %v2011_v17, %v2093_v7  ;;  %v2142_v7 = vsub.s32 %v2139_v38, %v4560_v4 }
 0x2d2   :  { %v1422_v35 = vpop.xlane.xlu0 %1421 }
 0x2d3   :  { %v1994_v50 = vadd.f32 %v1918_v43, %v1422_v35  ;;  %v2121_v43 = vsub.s32 %v2118_v49, %v4560_v4 }
 0x2d7   :  { %v1424_v1 = vpop.xlane.xlu0 %1423 }
 0x2d8   :  { %v1995_v57 = vadd.f32 %v1929_v45, %v1424_v1  ;;  %v2012_v45 = vadd.f32 %v4432_v26, %v1994_v50 }
 0x2da   :  { %v2013_v23 = vadd.f32 %v4432_v26, %v1995_v57  ;;  %v2101_v42 = vrot.slane %v2012_v45, %v2100_v9 }
 0x2db   :  { %v1426_v2 = vpop.xlane.xlu0 %1425 }
 0x2dc   :  { %v1996_v59 = vadd.f32 %v4421_v52, %v1426_v2  ;;  %v2132_v52 = vadd.s32 4294967184, %v4424_v63  ;;  %v2061_v2 = vsel %vm2060_vm3, %v2059_v36, %v2054_v25  ;;  %v2108_v34 = vrot.slane %v2013_v23, %v2107_v37 }
 0x2dd   :  { %v2068_v22 = vsel %vm2067_vm4, %v2066_v53, %v2061_v2 }
 0x2de   :  { %v2075_v33 = vsel %vm2074_vm5, %v2073_v3, %v2068_v22  ;;  %v2135_v14 = vsub.s32 %v2132_v52, %v4560_v4 }
 0x2df   :  { %v2082_v58 = vsel %vm2081_vm6, %v2080_v18, %v2075_v33 }
 0x2e0   :  { %v1428_v21 = vpop.xlane.xlu0 %1427  ;;  %v2089_v10 = vsel %vm2088_vm7, %v2087_v40, %v2082_v58 }
 0x2e1   :  { %v1997_v35 = vadd.f32 %v1951_v20, %v1428_v21  ;;  %v2014_v20 = vadd.f32 %v4432_v26, %v1996_v59  ;;  %v2096_v63 = vsel %vm2095_vm8, %v2094_v41, %v2089_v10 }
 0x2e2   :  { %v2103_v55 = vsel %vm2102_vm9, %v2101_v42, %v2096_v63 }
 0x2e3   :  { %v2015_v46 = vadd.f32 %v4432_v26, %v1997_v35  ;;  %v2115_v15 = vrot.slane %v2014_v20, %v2114_v13 }
 0x2e5   :  { %v2122_v16 = vrot.slane %v2015_v46, %v2121_v43 }
 0x2f0   :  { %v1430_v6 = vpop.xlane.xlu0 %1429 }
 0x2f1   :  { %v1998_v1 = vadd.f32 %v1962_v8, %v1430_v6  ;;  %v2110_v8 = vsel %vm2109_vm10, %v2108_v34, %v2103_v55 }
 0x2f2   :  { %v2117_v30 = vsel %vm2116_vm11, %v2115_v15, %v2110_v8 }
 0x2f3   :  { %v2016_v32 = vadd.f32 %v4432_v26, %v1998_v1  ;;  %v2124_v9 = vsel %vm2123_vm12, %v2122_v16, %v2117_v30 }
 0x2f4   :  { %v1432_v62 = vpop.xlane.xlu0 %1431 }
 0x2f5   :  { %v1999_v61 = vadd.f32 %v1973_v0, %v1432_v62  ;;  %v2129_v51 = vrot.slane %v2016_v32, %v2128_v56 }
 0x2f7   :  { %v2017_v54 = vadd.f32 %v4432_v26, %v1999_v61  ;;  %v2131_v12 = vsel %vm2130_vm13, %v2129_v51, %v2124_v9 }
 0x2f8   :  { %v1434_v29 = vpop.xlane.xlu0 %1433 }
 0x2f9   :  { %v2000_v21 = vadd.f32 %v1984_v48, %v1434_v29  ;;  %v2136_v31 = vrot.slane %v2017_v54, %v2135_v14 }
 0x2fb   :  { %v2018_v27 = vadd.f32 %v4432_v26, %v2000_v21  ;;  %v2138_v37 = vsel %vm2137_vm14, %v2136_v31, %v2131_v12 }
 0x2fd   :  { %v2143_v5 = vrot.slane %v2018_v27, %v2142_v7 }
 0x2ff   :  { %v2145_v49 = vsel %vm2144_vm15, %v2143_v5, %v2138_v37 }
 0x300   :  { %2147 = vst [vmem:[#allocation3] sm:$0x1] %v2145_v49 }
 0x301   :  { %2849 = shalt.err (!%p2846_p4)
}
 0x302   :  { %s2850_s17 = scalar_lea.hbm %s4530_s9, 16 }
 0x303   :  { %p2851_p5 = scmp.ne.s32.totalorder %s4530_s9, %s2850_s17  ;;  %p2854_p6 = scmp.lt.u32.totalorder %s2850_s17, %s4530_s9 }
 0x305   :  { %p2856_p7 = pnand %p2854_p6, %p2851_p5 }
 0x307   :  { %2859 = shalt.err (!%p2856_p7)
}
 0x308   :  { %2157 = dma.vmem_to_hbm [thread:$0]  %s2155_s13, 16, %s4530_s9, [#allocation4]  }
 0x309   :  { %2860 = dma.done.wait [#allocation4], 16  }
 0x30a   :  { %2861 = vsyncadd [#allocation4], 4294967280 }
 0x30b   :  { %2161 = vsyncpa [#allocation4], 1 }

</bundles_post_ra>
